<compile_context>
chip_gen: v7x
topology: tpu7x:2x2x1
jax: 0.10.0
libtpu: 0.0.40
codegen_flags: <defaults>
</compile_context>

<pallas_src>
import math
from functools import partial

import jax
import jax.numpy as jnp
from jax.experimental import pallas as pl
from jax.experimental.pallas import tpu as pltpu


# ----------------------------- model configuration --------------------------------
CHANNELS = (4, 8, 16)          # channel_ls
KERNEL_SIZE = 3
CONV_CFG = (                   # stride / padding / dilation per conv block
    {"stride": 2, "padding": 1, "dilation": 1},
    {"stride": 2, "padding": 1, "dilation": 1},
)
HIDDEN = 32                    # tower_width (GRU hidden size)
N_COVAR = 2                    # number of covariates
BN_EPS = 1e-5


def _conv_out_len(L_in, cfg):
    return (L_in + 2 * cfg["padding"]
            - cfg["dilation"] * (KERNEL_SIZE - 1) - 1) // cfg["stride"] + 1


# ===================================================================================
# In-kernel building blocks (pure jnp on values; used inside the fused kernel)
# ===================================================================================
def _conv_bn_relu(get_row, L_in, C_in, B, wmat, scale, shift, cfg):
    """im2col Conv1d + folded BatchNorm(eval) + ReLU.

    get_row(p) returns the (B, C_in) activation row at unpadded position p.
    Returns (L_out*B, C_out), ordered position-major / batch-minor, plus L_out.
    """
    s, p, d = cfg["stride"], cfg["padding"], cfg["dilation"]
    L_out = _conv_out_len(L_in, cfg)
    zero = jnp.zeros((B, C_in), jnp.float32)
    rows = []
    for l in range(L_out):                       # static -> fully unrolled
        taps = []
        for k in range(KERNEL_SIZE):
            pos = l * s + k * d - p
            taps.append(get_row(pos) if 0 <= pos < L_in else zero)
        rows.append(jnp.concatenate(taps, axis=1))          # (B, K*C_in)
    patches = jnp.concatenate(rows, axis=0)                 # (L_out*B, K*C_in)
    y = jnp.dot(patches, wmat, preferred_element_type=jnp.float32)
    return jnp.maximum(y * scale + shift, 0.0), L_out       # (L_out*B, C_out)


def _gru_cell(x, h, wi, wh, bi, bh, H):
    """PyTorch GRU cell with fused gate matmuls (gate order r, z, n)."""
    gi = jnp.dot(x, wi, preferred_element_type=jnp.float32) + bi     # (B, 3H)
    gh = jnp.dot(h, wh, preferred_element_type=jnp.float32) + bh     # (B, 3H)
    r = jax.nn.sigmoid(gi[:, 0:H] + gh[:, 0:H])
    z = jax.nn.sigmoid(gi[:, H:2 * H] + gh[:, H:2 * H])
    n = jnp.tanh(gi[:, 2 * H:3 * H] + r * gh[:, 2 * H:3 * H])
    return (1.0 - z) * n + z * h


# ===================================================================================
# The fused kernel: conv1 -> conv2 -> GRU(2 layers) -> covariate linear head
# ===================================================================================
def _rl_covar_reg_kernel(x_ref, cov_ref,
                         w1_ref, s1_ref, b1_ref,
                         w2_ref, s2_ref, b2_ref,
                         wi0_ref, wh0_ref, bi0_ref, bh0_ref,
                         wi1_ref, wh1_ref, bi1_ref, bh1_ref,
                         wfh_ref, wfc_ref, bf_ref,
                         o_ref, *, L):
    # x_ref  : (L*B, C0)  time-major / batch-minor flattened one-hot input
    # cov_ref: (n_covar, B)
    # w*_ref : (K*C_in, C_out) im2col conv weights; s*/b*: (1, C_out) folded BN
    # wi*/wh*: (in, 3H)/(H, 3H) fused GRU gate weights (r,z,n); bi*/bh*: (1, 3H)
    # wfh_ref: (1, H); wfc_ref: (n_covar, 1); bf_ref: (1, 1)
    # o_ref  : (1, B) lane-dense output
    B = cov_ref.shape[1]
    C0 = x_ref.shape[1]
    C1 = w1_ref.shape[1]
    H = wh0_ref.shape[0]

    # ---- conv block 1 ----
    xv = x_ref[...]                                                  # (L*B, C0)
    y1, L1 = _conv_bn_relu(lambda p: xv[p * B:(p + 1) * B, :], L, C0, B,
                           w1_ref[...], s1_ref[...], b1_ref[...], CONV_CFG[0])
    # ---- conv block 2 (input stays VMEM-resident, already time-major) ----
    y2, L2 = _conv_bn_relu(lambda p: y1[p * B:(p + 1) * B, :], L1, C1, B,
                           w2_ref[...], s2_ref[...], b2_ref[...], CONV_CFG[1])

    # ---- 2-layer GRU, unrolled over the short static sequence (T = L2) ----
    wi0 = wi0_ref[...]
    wh0 = wh0_ref[...]
    bi0 = bi0_ref[...]
    bh0 = bh0_ref[...]
    wi1 = wi1_ref[...]
    wh1 = wh1_ref[...]
    bi1 = bi1_ref[...]
    bh1 = bh1_ref[...]
    h0 = jnp.zeros((B, H), jnp.float32)
    h1 = jnp.zeros((B, H), jnp.float32)
    for t in range(L2):
        x_t = y2[t * B:(t + 1) * B, :]                               # (B, C_last)
        h0 = _gru_cell(x_t, h0, wi0, wh0, bi0, bh0, H)
        h1 = _gru_cell(h0, h1, wi1, wh1, bi1, bh1, H)

    # ---- Linear(H + n_covar, 1) on cat([c2, covar], 1), as split per-part
    #      contractions, written lane-dense as (1, B) ----
    head = jnp.dot(wfh_ref[...], jnp.transpose(h1),
                   preferred_element_type=jnp.float32)               # (1, B)
    covc = jnp.sum(wfc_ref[...] * cov_ref[...], axis=0, keepdims=True)   # (1, B)
    o_ref[...] = head + covc + bf_ref[...]


# ===================================================================================
# Wrapper (equivalent of RL_covar_reg.forward)
# ===================================================================================
def rl_covar_reg_forward(x_seq, x_covar, params):
    B, L, C0 = x_seq.shape
    assert x_covar.shape == (B, N_COVAR)
    tp = params["tower"]

    # Fold conv bias + eval-mode BatchNorm into per-channel scale/shift; flatten the
    # conv weights to im2col layout (K*C_in, C_out).  (Weight-sized, hoisted by jit.)
    def fold_conv(cp):
        K, cin, cout = cp["w"].shape
        wmat = cp["w"].reshape(K * cin, cout).astype(jnp.float32)
        scale = (cp["gamma"] / jnp.sqrt(cp["var"] + BN_EPS)).astype(jnp.float32)
        shift = ((cp["b"] - cp["mean"]) * scale + cp["beta"]).astype(jnp.float32)
        return wmat, scale.reshape(1, cout), shift.reshape(1, cout)

    w1, s1, b1 = fold_conv(params["conv"][0])
    w2, s2, b2 = fold_conv(params["conv"][1])

    # Time-major / batch-minor 2-D layout for the raw input; the kernel keeps this
    # layout all the way into the GRU, so no intermediate transpose ever hits HBM.
    x_flat = jnp.transpose(x_seq.astype(jnp.float32), (1, 0, 2)).reshape(L * B, C0)
    cov_t = jnp.transpose(x_covar.astype(jnp.float32), (1, 0))       # (n_covar, B)
    wfc_col = jnp.reshape(tp["wfc"].astype(jnp.float32), (N_COVAR, 1))

    args = (x_flat, cov_t, w1, s1, b1, w2, s2, b2,
            tp["wi0"], tp["wh0"], tp["bi0"], tp["bh0"],
            tp["wi1"], tp["wh1"], tp["bi1"], tp["bh1"],
            tp["wfh"], wfc_col, tp["bf"])

    out = pl.pallas_call(
        partial(_rl_covar_reg_kernel, L=L),
        out_shape=jax.ShapeDtypeStruct((1, B), jnp.float32),
        in_specs=[pl.BlockSpec(memory_space=pltpu.MemorySpace.VMEM) for _ in args],
        out_specs=pl.BlockSpec(memory_space=pltpu.MemorySpace.VMEM),
    )(*args)
    return out.reshape(B, 1)


# ===================================================================================
# Pure-JAX reference (mirrors PyTorch math) + parameter construction
# ===================================================================================
def _ref_forward(x_seq, x_covar, params):
    h = x_seq.astype(jnp.float32)
    for i, cfg in enumerate(CONV_CFG):
        cp = params["conv"][i]
        K = cp["w"].shape[0]
        s, p, d = cfg["stride"], cfg["padding"], cfg["dilation"]
        B, L_in, _ = h.shape
        L_out = (L_in + 2 * p - d * (K - 1) - 1) // s + 1
        hp = jnp.pad(h, ((0, 0), (p, p), (0, 0)))
        idx = (jnp.arange(L_out) * s)[:, None] + jnp.arange(K)[None, :] * d
        patches = hp[:, idx, :]                                  # (B, L_out, K, C_in)
        y = jnp.einsum("blkc,kco->blo", patches, cp["w"],
                       precision=jax.lax.Precision.HIGHEST) + cp["b"]
        y = (y - cp["mean"]) / jnp.sqrt(cp["var"] + BN_EPS) * cp["gamma"] + cp["beta"]
        h = jnp.maximum(y, 0.0)

    tp = params["tower"]
    B, T, _ = h.shape
    H = HIDDEN

    def cell(x, hh, wi, wh, bi, bh):
        gi = x @ wi + bi
        gh = hh @ wh + bh
        r = jax.nn.sigmoid(gi[:, :H] + gh[:, :H])
        z = jax.nn.sigmoid(gi[:, H:2 * H] + gh[:, H:2 * H])
        n = jnp.tanh(gi[:, 2 * H:] + r * gh[:, 2 * H:])
        return (1.0 - z) * n + z * hh

    h0 = jnp.zeros((B, H), jnp.float32)
    h1 = jnp.zeros((B, H), jnp.float32)
    for t in range(T):
        h0 = cell(h[:, t, :], h0, tp["wi0"], tp["wh0"], tp["bi0"], tp["bh0"])
        h1 = cell(h0, h1, tp["wi1"], tp["wh1"], tp["bi1"], tp["bh1"])
    return (h1 @ tp["wfh"].T + x_covar.astype(jnp.float32) @ tp["wfc"].T + tp["bf"])


def init_params(key):
    # NOTE: to load torch weights, Conv1d weight (C_out, C_in, K) -> transpose to
    # (K, C_in, C_out); GRU weight_ih/_hh (3H, in) -> transpose to (in, 3H) (gate
    # order r, z, n preserved); Linear weight (1, H+n_covar) -> split into wfh/wfc.
    params = {"conv": [], "tower": {}}
    for i in range(len(CHANNELS) - 1):
        cin, cout = CHANNELS[i], CHANNELS[i + 1]
        key, kw, kb, kg, kbe, km, kv = jax.random.split(key, 7)
        params["conv"].append({
            "w": jax.random.normal(kw, (KERNEL_SIZE, cin, cout), jnp.float32) * 0.3,
            "b": jax.random.normal(kb, (cout,), jnp.float32) * 0.1,
            "gamma": jax.random.uniform(kg, (cout,), jnp.float32, 0.5, 1.5),
            "beta": jax.random.normal(kbe, (cout,), jnp.float32) * 0.1,
            "mean": jax.random.normal(km, (cout,), jnp.float32) * 0.1,
            "var": jax.random.uniform(kv, (cout,), jnp.float32, 0.5, 1.5),
        })
    C = CHANNELS[-1]
    H = HIDDEN
    sk = jax.random.split(key, 11)
    s = 1.0 / math.sqrt(H)
    params["tower"] = {
        "wi0": jax.random.normal(sk[0], (C, 3 * H), jnp.float32) * s,
        "wh0": jax.random.normal(sk[1], (H, 3 * H), jnp.float32) * s,
        "bi0": jax.random.normal(sk[2], (1, 3 * H), jnp.float32) * s,
        "bh0": jax.random.normal(sk[3], (1, 3 * H), jnp.float32) * s,
        "wi1": jax.random.normal(sk[4], (H, 3 * H), jnp.float32) * s,
        "wh1": jax.random.normal(sk[5], (H, 3 * H), jnp.float32) * s,
        "bi1": jax.random.normal(sk[6], (1, 3 * H), jnp.float32) * s,
        "bh1": jax.random.normal(sk[7], (1, 3 * H), jnp.float32) * s,
        "wfh": jax.random.normal(sk[8], (1, H), jnp.float32) * s,
        "wfc": jax.random.normal(sk[9], (1, N_COVAR), jnp.float32) * s,
        "bf": jax.random.normal(sk[10], (1, 1), jnp.float32) * s,
    }
    return params


if __name__ == "__main__":
    B, L = 2, 16
    key = jax.random.PRNGKey(0)
    kp, kx, kc = jax.random.split(key, 3)

    params = init_params(kp)
    # one-hot sequence input (B, L, 4) and covariates (B, n_covar)
    x_seq = jax.nn.one_hot(jax.random.randint(kx, (B, L), 0, 4), 4, dtype=jnp.float32)
    x_covar = jax.random.normal(kc, (B, N_COVAR), jnp.float32)

    out = jax.jit(rl_covar_reg_forward)(x_seq, x_covar, params)
    out = jax.block_until_ready(out)

    ref = _ref_forward(x_seq, x_covar, params)
    assert out.shape == (B, 1), out.shape
    assert out.dtype == jnp.float32, out.dtype
    assert jnp.allclose(out, ref, atol=2e-2, rtol=2e-2), (out, ref)

    print("KERNEL_OK")
</pallas_src>

<mosaic_0001>
module attributes {stable_mosaic.version = 11 : i64} {
  func.func @_rl_covar_reg_kernel(%arg0: memref<32x4xf32, #tpu.memory_space<vmem>>, %arg1: memref<2x2xf32, #tpu.memory_space<vmem>>, %arg2: memref<12x8xf32, #tpu.memory_space<vmem>>, %arg3: memref<1x8xf32, #tpu.memory_space<vmem>>, %arg4: memref<1x8xf32, #tpu.memory_space<vmem>>, %arg5: memref<24x16xf32, #tpu.memory_space<vmem>>, %arg6: memref<1x16xf32, #tpu.memory_space<vmem>>, %arg7: memref<1x16xf32, #tpu.memory_space<vmem>>, %arg8: memref<16x96xf32, #tpu.memory_space<vmem>>, %arg9: memref<32x96xf32, #tpu.memory_space<vmem>>, %arg10: memref<1x96xf32, #tpu.memory_space<vmem>>, %arg11: memref<1x96xf32, #tpu.memory_space<vmem>>, %arg12: memref<32x96xf32, #tpu.memory_space<vmem>>, %arg13: memref<32x96xf32, #tpu.memory_space<vmem>>, %arg14: memref<1x96xf32, #tpu.memory_space<vmem>>, %arg15: memref<1x96xf32, #tpu.memory_space<vmem>>, %arg16: memref<1x32xf32, #tpu.memory_space<vmem>>, %arg17: memref<2x1xf32, #tpu.memory_space<vmem>>, %arg18: memref<1x1xf32, #tpu.memory_space<vmem>>, %arg19: memref<1x2xf32, #tpu.memory_space<vmem>>) attributes {dimension_semantics = [], scalar_prefetch = 0 : i64, scratch_operands = 0 : i64, tpu.core_type = #tpu.core_type<tc>} {
    %c0 = arith.constant 0 : index
    %c0_0 = arith.constant 0 : index
    %0 = vector.load %arg0[%c0, %c0_0] : memref<32x4xf32, #tpu.memory_space<vmem>>, vector<32x4xf32>
    %c0_1 = arith.constant 0 : index
    %c0_2 = arith.constant 0 : index
    %1 = vector.load %arg2[%c0_1, %c0_2] : memref<12x8xf32, #tpu.memory_space<vmem>>, vector<12x8xf32>
    %c0_3 = arith.constant 0 : index
    %c0_4 = arith.constant 0 : index
    %2 = vector.load %arg3[%c0_3, %c0_4] : memref<1x8xf32, #tpu.memory_space<vmem>>, vector<1x8xf32>
    %c0_5 = arith.constant 0 : index
    %c0_6 = arith.constant 0 : index
    %3 = vector.load %arg4[%c0_5, %c0_6] : memref<1x8xf32, #tpu.memory_space<vmem>>, vector<1x8xf32>
    %cst = arith.constant 0.000000e+00 : f32
    %4 = vector.broadcast %cst : f32 to vector<2x4xf32>
    %5 = vector.extract_strided_slice %0 {offsets = [0, 0], sizes = [2, 4], strides = [1, 1]} : vector<32x4xf32> to vector<2x4xf32>
    %6 = vector.extract_strided_slice %0 {offsets = [2, 0], sizes = [2, 4], strides = [1, 1]} : vector<32x4xf32> to vector<2x4xf32>
    %7 = tpu.concatenate %4, %5, %6 in 1 : vector<2x4xf32>, vector<2x4xf32>, vector<2x4xf32> -> vector<2x12xf32>
    %8 = vector.extract_strided_slice %0 {offsets = [2, 0], sizes = [2, 4], strides = [1, 1]} : vector<32x4xf32> to vector<2x4xf32>
    %9 = vector.extract_strided_slice %0 {offsets = [4, 0], sizes = [2, 4], strides = [1, 1]} : vector<32x4xf32> to vector<2x4xf32>
    %10 = vector.extract_strided_slice %0 {offsets = [6, 0], sizes = [2, 4], strides = [1, 1]} : vector<32x4xf32> to vector<2x4xf32>
    %11 = tpu.concatenate %8, %9, %10 in 1 : vector<2x4xf32>, vector<2x4xf32>, vector<2x4xf32> -> vector<2x12xf32>
    %12 = vector.extract_strided_slice %0 {offsets = [6, 0], sizes = [2, 4], strides = [1, 1]} : vector<32x4xf32> to vector<2x4xf32>
    %13 = vector.extract_strided_slice %0 {offsets = [8, 0], sizes = [2, 4], strides = [1, 1]} : vector<32x4xf32> to vector<2x4xf32>
    %14 = vector.extract_strided_slice %0 {offsets = [10, 0], sizes = [2, 4], strides = [1, 1]} : vector<32x4xf32> to vector<2x4xf32>
    %15 = tpu.concatenate %12, %13, %14 in 1 : vector<2x4xf32>, vector<2x4xf32>, vector<2x4xf32> -> vector<2x12xf32>
    %16 = vector.extract_strided_slice %0 {offsets = [10, 0], sizes = [2, 4], strides = [1, 1]} : vector<32x4xf32> to vector<2x4xf32>
    %17 = vector.extract_strided_slice %0 {offsets = [12, 0], sizes = [2, 4], strides = [1, 1]} : vector<32x4xf32> to vector<2x4xf32>
    %18 = vector.extract_strided_slice %0 {offsets = [14, 0], sizes = [2, 4], strides = [1, 1]} : vector<32x4xf32> to vector<2x4xf32>
    %19 = tpu.concatenate %16, %17, %18 in 1 : vector<2x4xf32>, vector<2x4xf32>, vector<2x4xf32> -> vector<2x12xf32>
    %20 = vector.extract_strided_slice %0 {offsets = [14, 0], sizes = [2, 4], strides = [1, 1]} : vector<32x4xf32> to vector<2x4xf32>
    %21 = vector.extract_strided_slice %0 {offsets = [16, 0], sizes = [2, 4], strides = [1, 1]} : vector<32x4xf32> to vector<2x4xf32>
    %22 = vector.extract_strided_slice %0 {offsets = [18, 0], sizes = [2, 4], strides = [1, 1]} : vector<32x4xf32> to vector<2x4xf32>
    %23 = tpu.concatenate %20, %21, %22 in 1 : vector<2x4xf32>, vector<2x4xf32>, vector<2x4xf32> -> vector<2x12xf32>
    %24 = vector.extract_strided_slice %0 {offsets = [18, 0], sizes = [2, 4], strides = [1, 1]} : vector<32x4xf32> to vector<2x4xf32>
    %25 = vector.extract_strided_slice %0 {offsets = [20, 0], sizes = [2, 4], strides = [1, 1]} : vector<32x4xf32> to vector<2x4xf32>
    %26 = vector.extract_strided_slice %0 {offsets = [22, 0], sizes = [2, 4], strides = [1, 1]} : vector<32x4xf32> to vector<2x4xf32>
    %27 = tpu.concatenate %24, %25, %26 in 1 : vector<2x4xf32>, vector<2x4xf32>, vector<2x4xf32> -> vector<2x12xf32>
    %28 = vector.extract_strided_slice %0 {offsets = [22, 0], sizes = [2, 4], strides = [1, 1]} : vector<32x4xf32> to vector<2x4xf32>
    %29 = vector.extract_strided_slice %0 {offsets = [24, 0], sizes = [2, 4], strides = [1, 1]} : vector<32x4xf32> to vector<2x4xf32>
    %30 = vector.extract_strided_slice %0 {offsets = [26, 0], sizes = [2, 4], strides = [1, 1]} : vector<32x4xf32> to vector<2x4xf32>
    %31 = tpu.concatenate %28, %29, %30 in 1 : vector<2x4xf32>, vector<2x4xf32>, vector<2x4xf32> -> vector<2x12xf32>
    %32 = vector.extract_strided_slice %0 {offsets = [26, 0], sizes = [2, 4], strides = [1, 1]} : vector<32x4xf32> to vector<2x4xf32>
    %33 = vector.extract_strided_slice %0 {offsets = [28, 0], sizes = [2, 4], strides = [1, 1]} : vector<32x4xf32> to vector<2x4xf32>
    %34 = vector.extract_strided_slice %0 {offsets = [30, 0], sizes = [2, 4], strides = [1, 1]} : vector<32x4xf32> to vector<2x4xf32>
    %35 = tpu.concatenate %32, %33, %34 in 1 : vector<2x4xf32>, vector<2x4xf32>, vector<2x4xf32> -> vector<2x12xf32>
    %36 = tpu.concatenate %7, %11, %15, %19, %23, %27, %31, %35 in 0 : vector<2x12xf32>, vector<2x12xf32>, vector<2x12xf32>, vector<2x12xf32>, vector<2x12xf32>, vector<2x12xf32>, vector<2x12xf32>, vector<2x12xf32> -> vector<16x12xf32>
    %cst_7 = arith.constant dense<0.000000e+00> : vector<16x8xf32>
    %37 = tpu.matmul %36, %1, %cst_7 {dimension_numbers = #tpu.dot_dimension_numbers<[1], [0], [0], [1], [0, 0, 1, 1], [], []>} : vector<16x12xf32>, vector<12x8xf32>, vector<16x8xf32> -> vector<16x8xf32>
    %38 = vector.broadcast %2 : vector<1x8xf32> to vector<16x8xf32>
    %39 = arith.mulf %37, %38 : vector<16x8xf32>
    %40 = vector.broadcast %3 : vector<1x8xf32> to vector<16x8xf32>
    %41 = arith.addf %39, %40 : vector<16x8xf32>
    %cst_8 = arith.constant 0.000000e+00 : f32
    %42 = vector.broadcast %cst_8 : f32 to vector<16x8xf32>
    %43 = arith.maximumf %41, %42 : vector<16x8xf32>
    %c0_9 = arith.constant 0 : index
    %c0_10 = arith.constant 0 : index
    %44 = vector.load %arg5[%c0_9, %c0_10] : memref<24x16xf32, #tpu.memory_space<vmem>>, vector<24x16xf32>
    %c0_11 = arith.constant 0 : index
    %c0_12 = arith.constant 0 : index
    %45 = vector.load %arg6[%c0_11, %c0_12] : memref<1x16xf32, #tpu.memory_space<vmem>>, vector<1x16xf32>
    %c0_13 = arith.constant 0 : index
    %c0_14 = arith.constant 0 : index
    %46 = vector.load %arg7[%c0_13, %c0_14] : memref<1x16xf32, #tpu.memory_space<vmem>>, vector<1x16xf32>
    %cst_15 = arith.constant 0.000000e+00 : f32
    %47 = vector.broadcast %cst_15 : f32 to vector<2x8xf32>
    %48 = vector.extract_strided_slice %43 {offsets = [0, 0], sizes = [2, 8], strides = [1, 1]} : vector<16x8xf32> to vector<2x8xf32>
    %49 = vector.extract_strided_slice %43 {offsets = [2, 0], sizes = [2, 8], strides = [1, 1]} : vector<16x8xf32> to vector<2x8xf32>
    %50 = tpu.concatenate %47, %48, %49 in 1 : vector<2x8xf32>, vector<2x8xf32>, vector<2x8xf32> -> vector<2x24xf32>
    %51 = vector.extract_strided_slice %43 {offsets = [2, 0], sizes = [2, 8], strides = [1, 1]} : vector<16x8xf32> to vector<2x8xf32>
    %52 = vector.extract_strided_slice %43 {offsets = [4, 0], sizes = [2, 8], strides = [1, 1]} : vector<16x8xf32> to vector<2x8xf32>
    %53 = vector.extract_strided_slice %43 {offsets = [6, 0], sizes = [2, 8], strides = [1, 1]} : vector<16x8xf32> to vector<2x8xf32>
    %54 = tpu.concatenate %51, %52, %53 in 1 : vector<2x8xf32>, vector<2x8xf32>, vector<2x8xf32> -> vector<2x24xf32>
    %55 = vector.extract_strided_slice %43 {offsets = [6, 0], sizes = [2, 8], strides = [1, 1]} : vector<16x8xf32> to vector<2x8xf32>
    %56 = vector.extract_strided_slice %43 {offsets = [8, 0], sizes = [2, 8], strides = [1, 1]} : vector<16x8xf32> to vector<2x8xf32>
    %57 = vector.extract_strided_slice %43 {offsets = [10, 0], sizes = [2, 8], strides = [1, 1]} : vector<16x8xf32> to vector<2x8xf32>
    %58 = tpu.concatenate %55, %56, %57 in 1 : vector<2x8xf32>, vector<2x8xf32>, vector<2x8xf32> -> vector<2x24xf32>
    %59 = vector.extract_strided_slice %43 {offsets = [10, 0], sizes = [2, 8], strides = [1, 1]} : vector<16x8xf32> to vector<2x8xf32>
    %60 = vector.extract_strided_slice %43 {offsets = [12, 0], sizes = [2, 8], strides = [1, 1]} : vector<16x8xf32> to vector<2x8xf32>
    %61 = vector.extract_strided_slice %43 {offsets = [14, 0], sizes = [2, 8], strides = [1, 1]} : vector<16x8xf32> to vector<2x8xf32>
    %62 = tpu.concatenate %59, %60, %61 in 1 : vector<2x8xf32>, vector<2x8xf32>, vector<2x8xf32> -> vector<2x24xf32>
    %63 = tpu.concatenate %50, %54, %58, %62 in 0 : vector<2x24xf32>, vector<2x24xf32>, vector<2x24xf32>, vector<2x24xf32> -> vector<8x24xf32>
    %cst_16 = arith.constant dense<0.000000e+00> : vector<8x16xf32>
    %64 = tpu.matmul %63, %44, %cst_16 {dimension_numbers = #tpu.dot_dimension_numbers<[1], [0], [0], [1], [0, 0, 1, 1], [], []>} : vector<8x24xf32>, vector<24x16xf32>, vector<8x16xf32> -> vector<8x16xf32>
    %65 = vector.broadcast %45 : vector<1x16xf32> to vector<8x16xf32>
    %66 = arith.mulf %64, %65 : vector<8x16xf32>
    %67 = vector.broadcast %46 : vector<1x16xf32> to vector<8x16xf32>
    %68 = arith.addf %66, %67 : vector<8x16xf32>
    %cst_17 = arith.constant 0.000000e+00 : f32
    %69 = vector.broadcast %cst_17 : f32 to vector<8x16xf32>
    %70 = arith.maximumf %68, %69 : vector<8x16xf32>
    %c0_18 = arith.constant 0 : index
    %c0_19 = arith.constant 0 : index
    %71 = vector.load %arg8[%c0_18, %c0_19] : memref<16x96xf32, #tpu.memory_space<vmem>>, vector<16x96xf32>
    %c0_20 = arith.constant 0 : index
    %c0_21 = arith.constant 0 : index
    %72 = vector.load %arg9[%c0_20, %c0_21] : memref<32x96xf32, #tpu.memory_space<vmem>>, vector<32x96xf32>
    %c0_22 = arith.constant 0 : index
    %c0_23 = arith.constant 0 : index
    %73 = vector.load %arg10[%c0_22, %c0_23] : memref<1x96xf32, #tpu.memory_space<vmem>>, vector<1x96xf32>
    %c0_24 = arith.constant 0 : index
    %c0_25 = arith.constant 0 : index
    %74 = vector.load %arg11[%c0_24, %c0_25] : memref<1x96xf32, #tpu.memory_space<vmem>>, vector<1x96xf32>
    %c0_26 = arith.constant 0 : index
    %c0_27 = arith.constant 0 : index
    %75 = vector.load %arg12[%c0_26, %c0_27] : memref<32x96xf32, #tpu.memory_space<vmem>>, vector<32x96xf32>
    %c0_28 = arith.constant 0 : index
    %c0_29 = arith.constant 0 : index
    %76 = vector.load %arg13[%c0_28, %c0_29] : memref<32x96xf32, #tpu.memory_space<vmem>>, vector<32x96xf32>
    %c0_30 = arith.constant 0 : index
    %c0_31 = arith.constant 0 : index
    %77 = vector.load %arg14[%c0_30, %c0_31] : memref<1x96xf32, #tpu.memory_space<vmem>>, vector<1x96xf32>
    %c0_32 = arith.constant 0 : index
    %c0_33 = arith.constant 0 : index
    %78 = vector.load %arg15[%c0_32, %c0_33] : memref<1x96xf32, #tpu.memory_space<vmem>>, vector<1x96xf32>
    %cst_34 = arith.constant 0.000000e+00 : f32
    %79 = vector.broadcast %cst_34 : f32 to vector<2x32xf32>
    %cst_35 = arith.constant 0.000000e+00 : f32
    %80 = vector.broadcast %cst_35 : f32 to vector<2x32xf32>
    %81 = vector.extract_strided_slice %70 {offsets = [0, 0], sizes = [2, 16], strides = [1, 1]} : vector<8x16xf32> to vector<2x16xf32>
    %cst_36 = arith.constant dense<0.000000e+00> : vector<2x96xf32>
    %82 = tpu.matmul %81, %71, %cst_36 {dimension_numbers = #tpu.dot_dimension_numbers<[1], [0], [0], [1], [0, 0, 1, 1], [], []>} : vector<2x16xf32>, vector<16x96xf32>, vector<2x96xf32> -> vector<2x96xf32>
    %83 = vector.broadcast %73 : vector<1x96xf32> to vector<2x96xf32>
    %84 = arith.addf %82, %83 : vector<2x96xf32>
    %cst_37 = arith.constant dense<0.000000e+00> : vector<2x96xf32>
    %85 = tpu.matmul %79, %72, %cst_37 {dimension_numbers = #tpu.dot_dimension_numbers<[1], [0], [0], [1], [0, 0, 1, 1], [], []>} : vector<2x32xf32>, vector<32x96xf32>, vector<2x96xf32> -> vector<2x96xf32>
    %86 = vector.broadcast %74 : vector<1x96xf32> to vector<2x96xf32>
    %87 = arith.addf %85, %86 : vector<2x96xf32>
    %88 = vector.extract_strided_slice %84 {offsets = [0, 0], sizes = [2, 32], strides = [1, 1]} : vector<2x96xf32> to vector<2x32xf32>
    %89 = vector.extract_strided_slice %87 {offsets = [0, 0], sizes = [2, 32], strides = [1, 1]} : vector<2x96xf32> to vector<2x32xf32>
    %90 = arith.addf %88, %89 : vector<2x32xf32>
    %91 = arith.negf %90 : vector<2x32xf32>
    %92 = math.exp %91 : vector<2x32xf32>
    %cst_38 = arith.constant 1.000000e+00 : f32
    %93 = vector.broadcast %cst_38 : f32 to vector<2x32xf32>
    %94 = arith.addf %93, %92 : vector<2x32xf32>
    %95 = arith.divf %93, %94 : vector<2x32xf32>
    %96 = vector.extract_strided_slice %84 {offsets = [0, 32], sizes = [2, 32], strides = [1, 1]} : vector<2x96xf32> to vector<2x32xf32>
    %97 = vector.extract_strided_slice %87 {offsets = [0, 32], sizes = [2, 32], strides = [1, 1]} : vector<2x96xf32> to vector<2x32xf32>
    %98 = arith.addf %96, %97 : vector<2x32xf32>
    %99 = arith.negf %98 : vector<2x32xf32>
    %100 = math.exp %99 : vector<2x32xf32>
    %cst_39 = arith.constant 1.000000e+00 : f32
    %101 = vector.broadcast %cst_39 : f32 to vector<2x32xf32>
    %102 = arith.addf %101, %100 : vector<2x32xf32>
    %103 = arith.divf %101, %102 : vector<2x32xf32>
    %104 = vector.extract_strided_slice %84 {offsets = [0, 64], sizes = [2, 32], strides = [1, 1]} : vector<2x96xf32> to vector<2x32xf32>
    %105 = vector.extract_strided_slice %87 {offsets = [0, 64], sizes = [2, 32], strides = [1, 1]} : vector<2x96xf32> to vector<2x32xf32>
    %106 = arith.mulf %95, %105 : vector<2x32xf32>
    %107 = arith.addf %104, %106 : vector<2x32xf32>
    %108 = math.tanh %107 : vector<2x32xf32>
    %cst_40 = arith.constant 1.000000e+00 : f32
    %109 = vector.broadcast %cst_40 : f32 to vector<2x32xf32>
    %110 = arith.subf %109, %103 : vector<2x32xf32>
    %111 = arith.mulf %110, %108 : vector<2x32xf32>
    %112 = arith.mulf %103, %79 : vector<2x32xf32>
    %113 = arith.addf %111, %112 : vector<2x32xf32>
    %cst_41 = arith.constant dense<0.000000e+00> : vector<2x96xf32>
    %114 = tpu.matmul %113, %75, %cst_41 {dimension_numbers = #tpu.dot_dimension_numbers<[1], [0], [0], [1], [0, 0, 1, 1], [], []>} : vector<2x32xf32>, vector<32x96xf32>, vector<2x96xf32> -> vector<2x96xf32>
    %115 = vector.broadcast %77 : vector<1x96xf32> to vector<2x96xf32>
    %116 = arith.addf %114, %115 : vector<2x96xf32>
    %cst_42 = arith.constant dense<0.000000e+00> : vector<2x96xf32>
    %117 = tpu.matmul %80, %76, %cst_42 {dimension_numbers = #tpu.dot_dimension_numbers<[1], [0], [0], [1], [0, 0, 1, 1], [], []>} : vector<2x32xf32>, vector<32x96xf32>, vector<2x96xf32> -> vector<2x96xf32>
    %118 = vector.broadcast %78 : vector<1x96xf32> to vector<2x96xf32>
    %119 = arith.addf %117, %118 : vector<2x96xf32>
    %120 = vector.extract_strided_slice %116 {offsets = [0, 0], sizes = [2, 32], strides = [1, 1]} : vector<2x96xf32> to vector<2x32xf32>
    %121 = vector.extract_strided_slice %119 {offsets = [0, 0], sizes = [2, 32], strides = [1, 1]} : vector<2x96xf32> to vector<2x32xf32>
    %122 = arith.addf %120, %121 : vector<2x32xf32>
    %123 = arith.negf %122 : vector<2x32xf32>
    %124 = math.exp %123 : vector<2x32xf32>
    %cst_43 = arith.constant 1.000000e+00 : f32
    %125 = vector.broadcast %cst_43 : f32 to vector<2x32xf32>
    %126 = arith.addf %125, %124 : vector<2x32xf32>
    %127 = arith.divf %125, %126 : vector<2x32xf32>
    %128 = vector.extract_strided_slice %116 {offsets = [0, 32], sizes = [2, 32], strides = [1, 1]} : vector<2x96xf32> to vector<2x32xf32>
    %129 = vector.extract_strided_slice %119 {offsets = [0, 32], sizes = [2, 32], strides = [1, 1]} : vector<2x96xf32> to vector<2x32xf32>
    %130 = arith.addf %128, %129 : vector<2x32xf32>
    %131 = arith.negf %130 : vector<2x32xf32>
    %132 = math.exp %131 : vector<2x32xf32>
    %cst_44 = arith.constant 1.000000e+00 : f32
    %133 = vector.broadcast %cst_44 : f32 to vector<2x32xf32>
    %134 = arith.addf %133, %132 : vector<2x32xf32>
    %135 = arith.divf %133, %134 : vector<2x32xf32>
    %136 = vector.extract_strided_slice %116 {offsets = [0, 64], sizes = [2, 32], strides = [1, 1]} : vector<2x96xf32> to vector<2x32xf32>
    %137 = vector.extract_strided_slice %119 {offsets = [0, 64], sizes = [2, 32], strides = [1, 1]} : vector<2x96xf32> to vector<2x32xf32>
    %138 = arith.mulf %127, %137 : vector<2x32xf32>
    %139 = arith.addf %136, %138 : vector<2x32xf32>
    %140 = math.tanh %139 : vector<2x32xf32>
    %cst_45 = arith.constant 1.000000e+00 : f32
    %141 = vector.broadcast %cst_45 : f32 to vector<2x32xf32>
    %142 = arith.subf %141, %135 : vector<2x32xf32>
    %143 = arith.mulf %142, %140 : vector<2x32xf32>
    %144 = arith.mulf %135, %80 : vector<2x32xf32>
    %145 = arith.addf %143, %144 : vector<2x32xf32>
    %146 = vector.extract_strided_slice %70 {offsets = [2, 0], sizes = [2, 16], strides = [1, 1]} : vector<8x16xf32> to vector<2x16xf32>
    %cst_46 = arith.constant dense<0.000000e+00> : vector<2x96xf32>
    %147 = tpu.matmul %146, %71, %cst_46 {dimension_numbers = #tpu.dot_dimension_numbers<[1], [0], [0], [1], [0, 0, 1, 1], [], []>} : vector<2x16xf32>, vector<16x96xf32>, vector<2x96xf32> -> vector<2x96xf32>
    %148 = vector.broadcast %73 : vector<1x96xf32> to vector<2x96xf32>
    %149 = arith.addf %147, %148 : vector<2x96xf32>
    %cst_47 = arith.constant dense<0.000000e+00> : vector<2x96xf32>
    %150 = tpu.matmul %113, %72, %cst_47 {dimension_numbers = #tpu.dot_dimension_numbers<[1], [0], [0], [1], [0, 0, 1, 1], [], []>} : vector<2x32xf32>, vector<32x96xf32>, vector<2x96xf32> -> vector<2x96xf32>
    %151 = vector.broadcast %74 : vector<1x96xf32> to vector<2x96xf32>
    %152 = arith.addf %150, %151 : vector<2x96xf32>
    %153 = vector.extract_strided_slice %149 {offsets = [0, 0], sizes = [2, 32], strides = [1, 1]} : vector<2x96xf32> to vector<2x32xf32>
    %154 = vector.extract_strided_slice %152 {offsets = [0, 0], sizes = [2, 32], strides = [1, 1]} : vector<2x96xf32> to vector<2x32xf32>
    %155 = arith.addf %153, %154 : vector<2x32xf32>
    %156 = arith.negf %155 : vector<2x32xf32>
    %157 = math.exp %156 : vector<2x32xf32>
    %cst_48 = arith.constant 1.000000e+00 : f32
    %158 = vector.broadcast %cst_48 : f32 to vector<2x32xf32>
    %159 = arith.addf %158, %157 : vector<2x32xf32>
    %160 = arith.divf %158, %159 : vector<2x32xf32>
    %161 = vector.extract_strided_slice %149 {offsets = [0, 32], sizes = [2, 32], strides = [1, 1]} : vector<2x96xf32> to vector<2x32xf32>
    %162 = vector.extract_strided_slice %152 {offsets = [0, 32], sizes = [2, 32], strides = [1, 1]} : vector<2x96xf32> to vector<2x32xf32>
    %163 = arith.addf %161, %162 : vector<2x32xf32>
    %164 = arith.negf %163 : vector<2x32xf32>
    %165 = math.exp %164 : vector<2x32xf32>
    %cst_49 = arith.constant 1.000000e+00 : f32
    %166 = vector.broadcast %cst_49 : f32 to vector<2x32xf32>
    %167 = arith.addf %166, %165 : vector<2x32xf32>
    %168 = arith.divf %166, %167 : vector<2x32xf32>
    %169 = vector.extract_strided_slice %149 {offsets = [0, 64], sizes = [2, 32], strides = [1, 1]} : vector<2x96xf32> to vector<2x32xf32>
    %170 = vector.extract_strided_slice %152 {offsets = [0, 64], sizes = [2, 32], strides = [1, 1]} : vector<2x96xf32> to vector<2x32xf32>
    %171 = arith.mulf %160, %170 : vector<2x32xf32>
    %172 = arith.addf %169, %171 : vector<2x32xf32>
    %173 = math.tanh %172 : vector<2x32xf32>
    %cst_50 = arith.constant 1.000000e+00 : f32
    %174 = vector.broadcast %cst_50 : f32 to vector<2x32xf32>
    %175 = arith.subf %174, %168 : vector<2x32xf32>
    %176 = arith.mulf %175, %173 : vector<2x32xf32>
    %177 = arith.mulf %168, %113 : vector<2x32xf32>
    %178 = arith.addf %176, %177 : vector<2x32xf32>
    %cst_51 = arith.constant dense<0.000000e+00> : vector<2x96xf32>
    %179 = tpu.matmul %178, %75, %cst_51 {dimension_numbers = #tpu.dot_dimension_numbers<[1], [0], [0], [1], [0, 0, 1, 1], [], []>} : vector<2x32xf32>, vector<32x96xf32>, vector<2x96xf32> -> vector<2x96xf32>
    %180 = vector.broadcast %77 : vector<1x96xf32> to vector<2x96xf32>
    %181 = arith.addf %179, %180 : vector<2x96xf32>
    %cst_52 = arith.constant dense<0.000000e+00> : vector<2x96xf32>
    %182 = tpu.matmul %145, %76, %cst_52 {dimension_numbers = #tpu.dot_dimension_numbers<[1], [0], [0], [1], [0, 0, 1, 1], [], []>} : vector<2x32xf32>, vector<32x96xf32>, vector<2x96xf32> -> vector<2x96xf32>
    %183 = vector.broadcast %78 : vector<1x96xf32> to vector<2x96xf32>
    %184 = arith.addf %182, %183 : vector<2x96xf32>
    %185 = vector.extract_strided_slice %181 {offsets = [0, 0], sizes = [2, 32], strides = [1, 1]} : vector<2x96xf32> to vector<2x32xf32>
    %186 = vector.extract_strided_slice %184 {offsets = [0, 0], sizes = [2, 32], strides = [1, 1]} : vector<2x96xf32> to vector<2x32xf32>
    %187 = arith.addf %185, %186 : vector<2x32xf32>
    %188 = arith.negf %187 : vector<2x32xf32>
    %189 = math.exp %188 : vector<2x32xf32>
    %cst_53 = arith.constant 1.000000e+00 : f32
    %190 = vector.broadcast %cst_53 : f32 to vector<2x32xf32>
    %191 = arith.addf %190, %189 : vector<2x32xf32>
    %192 = arith.divf %190, %191 : vector<2x32xf32>
    %193 = vector.extract_strided_slice %181 {offsets = [0, 32], sizes = [2, 32], strides = [1, 1]} : vector<2x96xf32> to vector<2x32xf32>
    %194 = vector.extract_strided_slice %184 {offsets = [0, 32], sizes = [2, 32], strides = [1, 1]} : vector<2x96xf32> to vector<2x32xf32>
    %195 = arith.addf %193, %194 : vector<2x32xf32>
    %196 = arith.negf %195 : vector<2x32xf32>
    %197 = math.exp %196 : vector<2x32xf32>
    %cst_54 = arith.constant 1.000000e+00 : f32
    %198 = vector.broadcast %cst_54 : f32 to vector<2x32xf32>
    %199 = arith.addf %198, %197 : vector<2x32xf32>
    %200 = arith.divf %198, %199 : vector<2x32xf32>
    %201 = vector.extract_strided_slice %181 {offsets = [0, 64], sizes = [2, 32], strides = [1, 1]} : vector<2x96xf32> to vector<2x32xf32>
    %202 = vector.extract_strided_slice %184 {offsets = [0, 64], sizes = [2, 32], strides = [1, 1]} : vector<2x96xf32> to vector<2x32xf32>
    %203 = arith.mulf %192, %202 : vector<2x32xf32>
    %204 = arith.addf %201, %203 : vector<2x32xf32>
    %205 = math.tanh %204 : vector<2x32xf32>
    %cst_55 = arith.constant 1.000000e+00 : f32
    %206 = vector.broadcast %cst_55 : f32 to vector<2x32xf32>
    %207 = arith.subf %206, %200 : vector<2x32xf32>
    %208 = arith.mulf %207, %205 : vector<2x32xf32>
    %209 = arith.mulf %200, %145 : vector<2x32xf32>
    %210 = arith.addf %208, %209 : vector<2x32xf32>
    %211 = vector.extract_strided_slice %70 {offsets = [4, 0], sizes = [2, 16], strides = [1, 1]} : vector<8x16xf32> to vector<2x16xf32>
    %cst_56 = arith.constant dense<0.000000e+00> : vector<2x96xf32>
    %212 = tpu.matmul %211, %71, %cst_56 {dimension_numbers = #tpu.dot_dimension_numbers<[1], [0], [0], [1], [0, 0, 1, 1], [], []>} : vector<2x16xf32>, vector<16x96xf32>, vector<2x96xf32> -> vector<2x96xf32>
    %213 = vector.broadcast %73 : vector<1x96xf32> to vector<2x96xf32>
    %214 = arith.addf %212, %213 : vector<2x96xf32>
    %cst_57 = arith.constant dense<0.000000e+00> : vector<2x96xf32>
    %215 = tpu.matmul %178, %72, %cst_57 {dimension_numbers = #tpu.dot_dimension_numbers<[1], [0], [0], [1], [0, 0, 1, 1], [], []>} : vector<2x32xf32>, vector<32x96xf32>, vector<2x96xf32> -> vector<2x96xf32>
    %216 = vector.broadcast %74 : vector<1x96xf32> to vector<2x96xf32>
    %217 = arith.addf %215, %216 : vector<2x96xf32>
    %218 = vector.extract_strided_slice %214 {offsets = [0, 0], sizes = [2, 32], strides = [1, 1]} : vector<2x96xf32> to vector<2x32xf32>
    %219 = vector.extract_strided_slice %217 {offsets = [0, 0], sizes = [2, 32], strides = [1, 1]} : vector<2x96xf32> to vector<2x32xf32>
    %220 = arith.addf %218, %219 : vector<2x32xf32>
    %221 = arith.negf %220 : vector<2x32xf32>
    %222 = math.exp %221 : vector<2x32xf32>
    %cst_58 = arith.constant 1.000000e+00 : f32
    %223 = vector.broadcast %cst_58 : f32 to vector<2x32xf32>
    %224 = arith.addf %223, %222 : vector<2x32xf32>
    %225 = arith.divf %223, %224 : vector<2x32xf32>
    %226 = vector.extract_strided_slice %214 {offsets = [0, 32], sizes = [2, 32], strides = [1, 1]} : vector<2x96xf32> to vector<2x32xf32>
    %227 = vector.extract_strided_slice %217 {offsets = [0, 32], sizes = [2, 32], strides = [1, 1]} : vector<2x96xf32> to vector<2x32xf32>
    %228 = arith.addf %226, %227 : vector<2x32xf32>
    %229 = arith.negf %228 : vector<2x32xf32>
    %230 = math.exp %229 : vector<2x32xf32>
    %cst_59 = arith.constant 1.000000e+00 : f32
    %231 = vector.broadcast %cst_59 : f32 to vector<2x32xf32>
    %232 = arith.addf %231, %230 : vector<2x32xf32>
    %233 = arith.divf %231, %232 : vector<2x32xf32>
    %234 = vector.extract_strided_slice %214 {offsets = [0, 64], sizes = [2, 32], strides = [1, 1]} : vector<2x96xf32> to vector<2x32xf32>
    %235 = vector.extract_strided_slice %217 {offsets = [0, 64], sizes = [2, 32], strides = [1, 1]} : vector<2x96xf32> to vector<2x32xf32>
    %236 = arith.mulf %225, %235 : vector<2x32xf32>
    %237 = arith.addf %234, %236 : vector<2x32xf32>
    %238 = math.tanh %237 : vector<2x32xf32>
    %cst_60 = arith.constant 1.000000e+00 : f32
    %239 = vector.broadcast %cst_60 : f32 to vector<2x32xf32>
    %240 = arith.subf %239, %233 : vector<2x32xf32>
    %241 = arith.mulf %240, %238 : vector<2x32xf32>
    %242 = arith.mulf %233, %178 : vector<2x32xf32>
    %243 = arith.addf %241, %242 : vector<2x32xf32>
    %cst_61 = arith.constant dense<0.000000e+00> : vector<2x96xf32>
    %244 = tpu.matmul %243, %75, %cst_61 {dimension_numbers = #tpu.dot_dimension_numbers<[1], [0], [0], [1], [0, 0, 1, 1], [], []>} : vector<2x32xf32>, vector<32x96xf32>, vector<2x96xf32> -> vector<2x96xf32>
    %245 = vector.broadcast %77 : vector<1x96xf32> to vector<2x96xf32>
    %246 = arith.addf %244, %245 : vector<2x96xf32>
    %cst_62 = arith.constant dense<0.000000e+00> : vector<2x96xf32>
    %247 = tpu.matmul %210, %76, %cst_62 {dimension_numbers = #tpu.dot_dimension_numbers<[1], [0], [0], [1], [0, 0, 1, 1], [], []>} : vector<2x32xf32>, vector<32x96xf32>, vector<2x96xf32> -> vector<2x96xf32>
    %248 = vector.broadcast %78 : vector<1x96xf32> to vector<2x96xf32>
    %249 = arith.addf %247, %248 : vector<2x96xf32>
    %250 = vector.extract_strided_slice %246 {offsets = [0, 0], sizes = [2, 32], strides = [1, 1]} : vector<2x96xf32> to vector<2x32xf32>
    %251 = vector.extract_strided_slice %249 {offsets = [0, 0], sizes = [2, 32], strides = [1, 1]} : vector<2x96xf32> to vector<2x32xf32>
    %252 = arith.addf %250, %251 : vector<2x32xf32>
    %253 = arith.negf %252 : vector<2x32xf32>
    %254 = math.exp %253 : vector<2x32xf32>
    %cst_63 = arith.constant 1.000000e+00 : f32
    %255 = vector.broadcast %cst_63 : f32 to vector<2x32xf32>
    %256 = arith.addf %255, %254 : vector<2x32xf32>
    %257 = arith.divf %255, %256 : vector<2x32xf32>
    %258 = vector.extract_strided_slice %246 {offsets = [0, 32], sizes = [2, 32], strides = [1, 1]} : vector<2x96xf32> to vector<2x32xf32>
    %259 = vector.extract_strided_slice %249 {offsets = [0, 32], sizes = [2, 32], strides = [1, 1]} : vector<2x96xf32> to vector<2x32xf32>
    %260 = arith.addf %258, %259 : vector<2x32xf32>
    %261 = arith.negf %260 : vector<2x32xf32>
    %262 = math.exp %261 : vector<2x32xf32>
    %cst_64 = arith.constant 1.000000e+00 : f32
    %263 = vector.broadcast %cst_64 : f32 to vector<2x32xf32>
    %264 = arith.addf %263, %262 : vector<2x32xf32>
    %265 = arith.divf %263, %264 : vector<2x32xf32>
    %266 = vector.extract_strided_slice %246 {offsets = [0, 64], sizes = [2, 32], strides = [1, 1]} : vector<2x96xf32> to vector<2x32xf32>
    %267 = vector.extract_strided_slice %249 {offsets = [0, 64], sizes = [2, 32], strides = [1, 1]} : vector<2x96xf32> to vector<2x32xf32>
    %268 = arith.mulf %257, %267 : vector<2x32xf32>
    %269 = arith.addf %266, %268 : vector<2x32xf32>
    %270 = math.tanh %269 : vector<2x32xf32>
    %cst_65 = arith.constant 1.000000e+00 : f32
    %271 = vector.broadcast %cst_65 : f32 to vector<2x32xf32>
    %272 = arith.subf %271, %265 : vector<2x32xf32>
    %273 = arith.mulf %272, %270 : vector<2x32xf32>
    %274 = arith.mulf %265, %210 : vector<2x32xf32>
    %275 = arith.addf %273, %274 : vector<2x32xf32>
    %276 = vector.extract_strided_slice %70 {offsets = [6, 0], sizes = [2, 16], strides = [1, 1]} : vector<8x16xf32> to vector<2x16xf32>
    %cst_66 = arith.constant dense<0.000000e+00> : vector<2x96xf32>
    %277 = tpu.matmul %276, %71, %cst_66 {dimension_numbers = #tpu.dot_dimension_numbers<[1], [0], [0], [1], [0, 0, 1, 1], [], []>} : vector<2x16xf32>, vector<16x96xf32>, vector<2x96xf32> -> vector<2x96xf32>
    %278 = vector.broadcast %73 : vector<1x96xf32> to vector<2x96xf32>
    %279 = arith.addf %277, %278 : vector<2x96xf32>
    %cst_67 = arith.constant dense<0.000000e+00> : vector<2x96xf32>
    %280 = tpu.matmul %243, %72, %cst_67 {dimension_numbers = #tpu.dot_dimension_numbers<[1], [0], [0], [1], [0, 0, 1, 1], [], []>} : vector<2x32xf32>, vector<32x96xf32>, vector<2x96xf32> -> vector<2x96xf32>
    %281 = vector.broadcast %74 : vector<1x96xf32> to vector<2x96xf32>
    %282 = arith.addf %280, %281 : vector<2x96xf32>
    %283 = vector.extract_strided_slice %279 {offsets = [0, 0], sizes = [2, 32], strides = [1, 1]} : vector<2x96xf32> to vector<2x32xf32>
    %284 = vector.extract_strided_slice %282 {offsets = [0, 0], sizes = [2, 32], strides = [1, 1]} : vector<2x96xf32> to vector<2x32xf32>
    %285 = arith.addf %283, %284 : vector<2x32xf32>
    %286 = arith.negf %285 : vector<2x32xf32>
    %287 = math.exp %286 : vector<2x32xf32>
    %cst_68 = arith.constant 1.000000e+00 : f32
    %288 = vector.broadcast %cst_68 : f32 to vector<2x32xf32>
    %289 = arith.addf %288, %287 : vector<2x32xf32>
    %290 = arith.divf %288, %289 : vector<2x32xf32>
    %291 = vector.extract_strided_slice %279 {offsets = [0, 32], sizes = [2, 32], strides = [1, 1]} : vector<2x96xf32> to vector<2x32xf32>
    %292 = vector.extract_strided_slice %282 {offsets = [0, 32], sizes = [2, 32], strides = [1, 1]} : vector<2x96xf32> to vector<2x32xf32>
    %293 = arith.addf %291, %292 : vector<2x32xf32>
    %294 = arith.negf %293 : vector<2x32xf32>
    %295 = math.exp %294 : vector<2x32xf32>
    %cst_69 = arith.constant 1.000000e+00 : f32
    %296 = vector.broadcast %cst_69 : f32 to vector<2x32xf32>
    %297 = arith.addf %296, %295 : vector<2x32xf32>
    %298 = arith.divf %296, %297 : vector<2x32xf32>
    %299 = vector.extract_strided_slice %279 {offsets = [0, 64], sizes = [2, 32], strides = [1, 1]} : vector<2x96xf32> to vector<2x32xf32>
    %300 = vector.extract_strided_slice %282 {offsets = [0, 64], sizes = [2, 32], strides = [1, 1]} : vector<2x96xf32> to vector<2x32xf32>
    %301 = arith.mulf %290, %300 : vector<2x32xf32>
    %302 = arith.addf %299, %301 : vector<2x32xf32>
    %303 = math.tanh %302 : vector<2x32xf32>
    %cst_70 = arith.constant 1.000000e+00 : f32
    %304 = vector.broadcast %cst_70 : f32 to vector<2x32xf32>
    %305 = arith.subf %304, %298 : vector<2x32xf32>
    %306 = arith.mulf %305, %303 : vector<2x32xf32>
    %307 = arith.mulf %298, %243 : vector<2x32xf32>
    %308 = arith.addf %306, %307 : vector<2x32xf32>
    %cst_71 = arith.constant dense<0.000000e+00> : vector<2x96xf32>
    %309 = tpu.matmul %308, %75, %cst_71 {dimension_numbers = #tpu.dot_dimension_numbers<[1], [0], [0], [1], [0, 0, 1, 1], [], []>} : vector<2x32xf32>, vector<32x96xf32>, vector<2x96xf32> -> vector<2x96xf32>
    %310 = vector.broadcast %77 : vector<1x96xf32> to vector<2x96xf32>
    %311 = arith.addf %309, %310 : vector<2x96xf32>
    %cst_72 = arith.constant dense<0.000000e+00> : vector<2x96xf32>
    %312 = tpu.matmul %275, %76, %cst_72 {dimension_numbers = #tpu.dot_dimension_numbers<[1], [0], [0], [1], [0, 0, 1, 1], [], []>} : vector<2x32xf32>, vector<32x96xf32>, vector<2x96xf32> -> vector<2x96xf32>
    %313 = vector.broadcast %78 : vector<1x96xf32> to vector<2x96xf32>
    %314 = arith.addf %312, %313 : vector<2x96xf32>
    %315 = vector.extract_strided_slice %311 {offsets = [0, 0], sizes = [2, 32], strides = [1, 1]} : vector<2x96xf32> to vector<2x32xf32>
    %316 = vector.extract_strided_slice %314 {offsets = [0, 0], sizes = [2, 32], strides = [1, 1]} : vector<2x96xf32> to vector<2x32xf32>
    %317 = arith.addf %315, %316 : vector<2x32xf32>
    %318 = arith.negf %317 : vector<2x32xf32>
    %319 = math.exp %318 : vector<2x32xf32>
    %cst_73 = arith.constant 1.000000e+00 : f32
    %320 = vector.broadcast %cst_73 : f32 to vector<2x32xf32>
    %321 = arith.addf %320, %319 : vector<2x32xf32>
    %322 = arith.divf %320, %321 : vector<2x32xf32>
    %323 = vector.extract_strided_slice %311 {offsets = [0, 32], sizes = [2, 32], strides = [1, 1]} : vector<2x96xf32> to vector<2x32xf32>
    %324 = vector.extract_strided_slice %314 {offsets = [0, 32], sizes = [2, 32], strides = [1, 1]} : vector<2x96xf32> to vector<2x32xf32>
    %325 = arith.addf %323, %324 : vector<2x32xf32>
    %326 = arith.negf %325 : vector<2x32xf32>
    %327 = math.exp %326 : vector<2x32xf32>
    %cst_74 = arith.constant 1.000000e+00 : f32
    %328 = vector.broadcast %cst_74 : f32 to vector<2x32xf32>
    %329 = arith.addf %328, %327 : vector<2x32xf32>
    %330 = arith.divf %328, %329 : vector<2x32xf32>
    %331 = vector.extract_strided_slice %311 {offsets = [0, 64], sizes = [2, 32], strides = [1, 1]} : vector<2x96xf32> to vector<2x32xf32>
    %332 = vector.extract_strided_slice %314 {offsets = [0, 64], sizes = [2, 32], strides = [1, 1]} : vector<2x96xf32> to vector<2x32xf32>
    %333 = arith.mulf %322, %332 : vector<2x32xf32>
    %334 = arith.addf %331, %333 : vector<2x32xf32>
    %335 = math.tanh %334 : vector<2x32xf32>
    %cst_75 = arith.constant 1.000000e+00 : f32
    %336 = vector.broadcast %cst_75 : f32 to vector<2x32xf32>
    %337 = arith.subf %336, %330 : vector<2x32xf32>
    %338 = arith.mulf %337, %335 : vector<2x32xf32>
    %339 = arith.mulf %330, %275 : vector<2x32xf32>
    %340 = arith.addf %338, %339 : vector<2x32xf32>
    %c0_76 = arith.constant 0 : index
    %c0_77 = arith.constant 0 : index
    %341 = vector.load %arg16[%c0_76, %c0_77] : memref<1x32xf32, #tpu.memory_space<vmem>>, vector<1x32xf32>
    %342 = tpu.transpose %340, [1, 0] : vector<2x32xf32> -> vector<32x2xf32>
    %cst_78 = arith.constant dense<0.000000e+00> : vector<1x2xf32>
    %343 = tpu.matmul %341, %342, %cst_78 {dimension_numbers = #tpu.dot_dimension_numbers<[1], [0], [0], [1], [0, 0, 1, 1], [], []>} : vector<1x32xf32>, vector<32x2xf32>, vector<1x2xf32> -> vector<1x2xf32>
    %c0_79 = arith.constant 0 : index
    %c0_80 = arith.constant 0 : index
    %344 = vector.load %arg17[%c0_79, %c0_80] : memref<2x1xf32, #tpu.memory_space<vmem>>, vector<2x1xf32>
    %c0_81 = arith.constant 0 : index
    %c0_82 = arith.constant 0 : index
    %345 = vector.load %arg1[%c0_81, %c0_82] : memref<2x2xf32, #tpu.memory_space<vmem>>, vector<2x2xf32>
    %346 = vector.broadcast %344 : vector<2x1xf32> to vector<2x2xf32>
    %347 = arith.mulf %346, %345 : vector<2x2xf32>
    %cst_83 = arith.constant dense<0.000000e+00> : vector<2xf32>
    %348 = vector.multi_reduction <add>, %347, %cst_83 [0] : vector<2x2xf32> to vector<2xf32>
    %349 = vector.shape_cast %348 : vector<2xf32> to vector<1x2xf32>
    %350 = arith.addf %343, %349 : vector<1x2xf32>
    %c0_84 = arith.constant 0 : index
    %c0_85 = arith.constant 0 : index
    %351 = vector.load %arg18[%c0_84, %c0_85] : memref<1x1xf32, #tpu.memory_space<vmem>>, vector<1x1xf32>
    %352 = vector.broadcast %351 : vector<1x1xf32> to vector<1x2xf32>
    %353 = arith.addf %350, %352 : vector<1x2xf32>
    %c0_86 = arith.constant 0 : index
    %c0_87 = arith.constant 0 : index
    %354 = vector.load %arg19[%c0_86, %c0_87] : memref<1x2xf32, #tpu.memory_space<vmem>>, vector<1x2xf32>
    tpu.vector_store %arg19[%c0_86, %c0_87], %353 {strides = array<i32>} : memref<1x2xf32, #tpu.memory_space<vmem>>, vector<1x2xf32>,
    return
  }
}

</mosaic_0001>

<bundles_post_ra>
// kernel: rl_covar_reg_forward.1
= control target key start
LH: loop header
LB: loop body
LE: loop exit
PB: predicated region body
PF: predicated region fallthrough
CT: control target
= control target key end

     0   :  { %s2895_s0 = inlined_call_operand.vmem [shape: f32[32,4], index: 0, kind: input, shape index: {}]   ;;  %s2896_s1 = inlined_call_operand.vmem [shape: f32[2,2], index: 1, kind: input, shape index: {}]   ;;  %s2897_s2 = inlined_call_operand.vmem [shape: f32[12,8], index: 2, kind: input, shape index: {}]   ;;  %s2898_s3 = inlined_call_operand.vmem [shape: f32[1,8], index: 3, kind: input, shape index: {}]   ;;  %s2899_s4 = inlined_call_operand.vmem [shape: f32[1,8], index: 4, kind: input, shape index: {}]   ;;  %s2900_s5 = inlined_call_operand.vmem [shape: f32[24,16], index: 5, kind: input, shape index: {}]   ;;  %s2901_s6 = inlined_call_operand.vmem [shape: f32[1,16], index: 6, kind: input, shape index: {}]   ;;  %s2902_s7 = inlined_call_operand.vmem [shape: f32[1,16], index: 7, kind: input, shape index: {}]   ;;  %s2903_s8 = inlined_call_operand.vmem [shape: f32[16,96], index: 8, kind: input, shape index: {}]   ;;  %s2904_s9 = inlined_call_operand.vmem [shape: f32[32,96], index: 9, kind: input, shape index: {}]   ;;  %s2905_s10 = inlined_call_operand.vmem [shape: f32[1,96], index: 10, kind: input, shape index: {}]   ;;  %s2906_s11 = inlined_call_operand.vmem [shape: f32[1,96], index: 11, kind: input, shape index: {}]   ;;  %s2907_s12 = inlined_call_operand.vmem [shape: f32[32,96], index: 12, kind: input, shape index: {}]   ;;  %s2908_s13 = inlined_call_operand.vmem [shape: f32[32,96], index: 13, kind: input, shape index: {}]   ;;  %s2909_s14 = inlined_call_operand.vmem [shape: f32[1,96], index: 14, kind: input, shape index: {}]   ;;  %s2910_s15 = inlined_call_operand.vmem [shape: f32[1,96], index: 15, kind: input, shape index: {}]   ;;  %s2911_s16 = inlined_call_operand.vmem [shape: f32[1,32], index: 16, kind: input, shape index: {}]   ;;  %s2912_s17 = inlined_call_operand.vmem [shape: f32[2,1], index: 17, kind: input, shape index: {}]   ;;  %s2913_s18 = inlined_call_operand.<no memory space> [shape: f32[1,1], index: 18, kind: input, shape index: {}]   ;;  %s2914_s19 = inlined_call_operand.hbm [shape: f32[1,2], index: 19, kind: output, shape index: {}]  }
   0x1   :  { %2917 = sst [smem:[#allocation6_spill]] %s2895_s0  ;;  %v24_v0 = vstv %s2913_s18 }
   0x2   :  { %2918 = sst [smem:[#allocation7_spill]] %s2896_s1  ;;  %25 = vst [vmem:[#allocation2] sm:$0x1] %v24_v0 }
   0x3   :  { %2919 = sst [smem:[#allocation8_spill]] %s2897_s2 }
   0x4   :  { %2920 = sst [smem:[#allocation9_spill]] %s2898_s3 }
   0x5   :  { %s2921_s1 = sld [smem:[#allocation6_spill]]  ;;  %s2416_s25 = smov 4  }
   0xb   :  { %v65_v1 = vld [vmem:[%s2921_s1] sm:$0xff]  ;;  %v66_v2 = vld [vmem:[%s2921_s1 + $0x8] sm:$0xff]  ;;  %v67_v3 = vld [vmem:[%s2921_s1 + $0x10] sm:$0xff] }
   0xc   :  { %74 = vrot.lane.b32.xlu1 %v65_v1, %s2416_s25  ;;  %v95_v4 = vrot.slane %v66_v2, 2  ;;  %v77_v5 = vrot.slane %v65_v1, 2 }
   0xd   :  { %26 = vsyncpa [#allocation4], 0  ;;  %v108_v6 = vrot.slane %v67_v3, 2  ;;  %s2922_s26 = sld [smem:[#allocation8_spill]]  ;;  %v112_v9 = vrot.slane %v67_v3, 4  ;;  %vm150_vm0 = vcmask 1043456  }
   0xe   :  { %96 = vrot.lane.b32.xlu0 %v95_v4, %s2416_s25  ;;  %vm2417_vm1 = vmmov 1   ;;  %v99_v11 = vrot.slane %v66_v2, 4  ;;  %v68_v12 = vld [vmem:[%s2921_s1 + $0x18] sm:$0xff]  ;;  %s2418_s30 = smov 8   ;;  %v88_v15 = vrot.slane %v65_v1, 4  ;;  %vm81_vm3 = vcmask 31744  }
   0xf   :  { %vm2239_vm2 = vmpackc.low %vm150_vm0, %vm2417_vm1  ;;  %v121_v13 = vrot.slane %v68_v12, 2  ;;  %v125_v14 = vrot.slane %v68_v12, 4  ;;  %vm83_vm4 = vcmask 64512   ;;  %vm148_vm5 = vcmask 1041408   ;;  %s2923_s1 = sld [smem:[#allocation9_spill]]  ;;  %v260_v56 = vld [vmem:[%s2900_s5] sm:$0xff] }
  0x10   :  { %85 = vrot.lane.b32.xlu1 %v77_v5, %s2416_s25  ;;  %vm152_vm6 = vcmask 1045504   ;;  %vm157_vm7 = vcmask 97280   ;;  %v1943_v54 = vld [vmem:[%s2899_s4] ss:$0 sm:$0xff]  ;;  %v261_v57 = vld [vmem:[%s2900_s5 + $0x8] sm:$0xff]  ;;  %v2419_v60 = vmov 0.0|0.0  }
  0x11   :  { %2244 = vmatprep.subr.bf16.mxu1 %v2419_v60  ;;  %v2245_v61 = vpack.c.bf16 %v261_v57, %v260_v56  ;;  %v2420_v4 = vmov 0.0   ;;  %vm2421_vm8 = vmmov 0   ;;  %vm274_vm9 = vcmask 130048  }
  0x12   :  { %109 = vrot.lane.b32.xlu0 %v108_v6, %s2416_s25  ;;  %2070 = vmatprep.mubr.msk.f32.mxu1 %vm2421_vm8, %v2420_v4  ;;  %vm307_vm10 = vcmask 195584   ;;  %vm499_vm11 = vcmask 261120   ;;  %vm1826_vm12 = vcmask 9216   ;;  %vm1923_vm13 = vcmask 8192  }
  0x13   :  { %v69_v7 = vld [vmem:[%s2922_s26] sm:$0xff]  ;;  %v70_v8 = vld [vmem:[%s2922_s26 + $0x8] sm:$0xf]  ;;  %2246 = vmatpush3.bf16.msra.mxu1 %v2245_v61 }
  0x14   :  { %v2238_v10 = vpack.c.bf16 %v70_v8, %v69_v7  ;;  %113 = vrot.lane.b32.xlu1 %v112_v9, %s2418_s30  ;;  %2068 = vmatprep.subr.mxu1 %v2420_v4 }
  0x15   :  { %v1942_v53 = vld [vmem:[%s2923_s1] ss:$0 sm:$0xff] }
  0x16   :  { %2240 = vmatprep.subr.msk.bf16.mxu0 %vm2239_vm2, %v2238_v10  ;;  %100 = vrot.lane.b32.xlu0 %v99_v11, %s2418_s30 }
  0x17   :  { %2243 = vmatpush3.bf16.msk.msra.mxu0 %vm2239_vm2, %v2238_v10 }
  0x18   :  { %78 = vrot.lane.b32.xlu1 %v77_v5, %s2418_s30  ;;  %2247 = vmatprep.subr.bf16.mxu0 %v2419_v60 }
  0x1a   :  { %122 = vrot.lane.b32.xlu0 %v121_v13, %s2416_s25 }
  0x1c   :  { %126 = vrot.lane.b32.xlu1 %v125_v14, %s2418_s30 }
  0x1e   :  { %89 = vrot.lane.b32.xlu0 %v88_v15, %s2418_s30 }
  0x7e   :  { %v75_v16 = vpop.permute.xlu1 %74 }
  0x7f   :  { %v82_v38 = vsel %vm81_vm3, 0.0, %v75_v16 }
  0x80   :  { %v97_v17 = vpop.permute.xlu0 %96 }
  0x81   :  { %v103_v28 = vsel %vm81_vm3, %v65_v1, %v97_v17  ;;  %v105_v31 = vsel %vm81_vm3, %v66_v2, %v97_v17 }
  0x82   :  { %v86_v18 = vpop.permute.xlu1 %85 }
  0x83   :  { %v92_v39 = vsel %vm81_vm3, %v65_v1, %v86_v18 }
  0x84   :  { %v110_v19 = vpop.permute.xlu0 %109 }
  0x85   :  { %v116_v20 = vsel %vm81_vm3, %v66_v2, %v110_v19  ;;  %v118_v25 = vsel %vm81_vm3, %v67_v3, %v110_v19  ;;  %v262_v2 = vld [vmem:[%s2900_s5 + $0x10] sm:$0xff]  ;;  %s2422_s5 = smov 16   ;;  %v398_v19 = vld [vmem:[%s2904_s9] sm:$0xff] }
  0x86   :  { %v114_v21 = vpop.permute.xlu1 %113  ;;  %2069 = vmatpush3.msra.mxu1 %v262_v2  ;;  %v411_v2 = vld [vmem:[%s2908_s13 + $0x18] sm:$0xff] }
  0x87   :  { %v117_v23 = vsel %vm83_vm4, %v116_v20, %v114_v21  ;;  %v119_v34 = vsel %vm83_vm4, %v118_v25, %v114_v21  ;;  %2250 = vmatprep.subr.bf16.mxu1 %v2419_v60  ;;  %v399_v20 = vld [vmem:[%s2904_s9 + $0x8] sm:$0xff] }
  0x88   :  { %v101_v22 = vpop.permute.xlu0 %100  ;;  %v140_v26 = vrot.slane %v117_v23, 6 }
  0x89   :  { %v104_v32 = vsel %vm83_vm4, %v103_v28, %v101_v22  ;;  %v106_v35 = vsel %vm83_vm4, %v105_v31, %v101_v22  ;;  %v2617_v28 = vpack.c.bf16 %v399_v20, %v398_v19  ;;  %v401_v31 = vld [vmem:[%s2904_s9 + $0x18] sm:$0xff] }
  0x8a   :  { %v79_v24 = vpop.permute.xlu1 %78  ;;  %v154_v40 = vsel %vm148_vm5, %v140_v26, %v119_v34  ;;  %v134_v43 = vrot.slane %v104_v32, 2  ;;  %v137_v47 = vrot.slane %v106_v35, 4  ;;  %v396_v34 = vld [vmem:[%s2903_s8] sm:$0xff]  ;;  %v397_v35 = vld [vmem:[%s2903_s8 + $0x8] sm:$0xff] }
  0x8b   :  { %v84_v44 = vsel %vm83_vm4, %v82_v38, %v79_v24  ;;  %v1946_v38 = vld [vmem:[%s2902_s7] ss:$0 sm:$0xff]  ;;  %s2924_s7 = sld [smem:[#allocation7_spill]] }
  0x8c   :  { %v123_v27 = vpop.permute.xlu0 %122 }
  0x8d   :  { %v129_v29 = vsel %vm81_vm3, %v67_v3, %v123_v27  ;;  %v131_v30 = vsel %vm81_vm3, %v68_v12, %v123_v27 }
  0x8e   :  { %v127_v33 = vpop.permute.xlu1 %126 }
  0x8f   :  { %v130_v36 = vsel %vm83_vm4, %v129_v29, %v127_v33  ;;  %v132_v37 = vsel %vm83_vm4, %v131_v30, %v127_v33  ;;  %v400_v30 = vld [vmem:[%s2904_s9 + $0x10] sm:$0xff] }
  0x90   :  { %v143_v41 = vrot.slane %v130_v36, 2  ;;  %v90_v42 = vpop.permute.xlu0 %89  ;;  %v146_v45 = vrot.slane %v132_v37, 4  ;;  %v2628_v33 = vpack.c.bf16 %v401_v31, %v400_v30  ;;  %v2644_v36 = vpack.c.bf16 %v397_v35, %v396_v34  ;;  %v1945_v37 = vld [vmem:[%s2901_s6] ss:$0 sm:$0xff]  ;;  %s2423_s6 = smov 64  }
  0x91   :  { %v93_v46 = vsel %vm83_vm4, %v92_v39, %v90_v42 }
  0x92   :  { %v149_v48 = vsel %vm148_vm5, %v84_v44, %v93_v46  ;;  %v155_v49 = vsel %vm150_vm0, %v154_v40, %v143_v41  ;;  %v2659_v44 = vld [vmem:[%s2906_s11] ss:$0 sm:$0xff] }
  0x93   :  { %v151_v50 = vsel %vm150_vm0, %v149_v48, %v134_v43  ;;  %v156_v52 = vsel %vm152_vm6, %v155_v49, %v146_v45  ;;  %v2670_v48 = vld [vmem:[%s2905_s10] ss:$0 sm:$0xff] }
  0x94   :  { %v153_v51 = vsel %vm152_vm6, %v151_v50, %v137_v47 }
  0x95   :  { %2061 = vmatprep.mubr.msk.f32.mxu0 %vm157_vm7, %v153_v51 }
  0x96   :  { %2062 = vmatmul.mubr.msk.f32.vlgmr.msra.gmra.mrb[0].mxu0 %vm157_vm7, %v156_v52 }
  0x97   :  { %2077 = vmatprep.mubr.msk.f32.mxu0 %vm2421_vm8, %v2420_v4  ;;  %2249 = vmatpush3.bf16.msra.mxu0 %v2644_v36 }
  0x98   :  { %2256 = vmatprep.subr.bf16.mxu0 %v2419_v60 }
 0x169   :  { %v2063_v55 = vpop.f32.mrb[0].mxu0 }
 0x16a   :  { %v249_v58 = vmul.f32 %v2063_v55, %v1942_v53  ;;  %v233_v59 = vpop.f32.mrb[1].mxu0 }
 0x16b   :  { %v248_v62 = vmul.f32 %v1942_v53, %v233_v59 }
 0x16c   :  { %v257_v63 = vadd.f32 %v1943_v54, %v249_v58 }
 0x16d   :  { %v256_v0 = vadd.f32 %v1943_v54, %v248_v62  ;;  %v408_v62 = vld [vmem:[%s2908_s13] sm:$0xff] }
 0x16e   :  { %v259_v1 = vmax.f32 %v257_v63, 0.0  ;;  %v409_v63 = vld [vmem:[%s2908_s13 + $0x8] sm:$0xff] }
 0x16f   :  { %v258_v3 = vmax.f32 %v256_v0, 0.0  ;;  %v410_v0 = vld [vmem:[%s2908_s13 + $0x10] sm:$0xff] }
 0x170   :  { %v286_v5 = vrot.slane %v259_v1, 2  ;;  %v290_v6 = vrot.slane %v259_v1, 4 }
 0x171   :  { %266 = vrot.lane.b32.xlu1 %v258_v3, %s2418_s30  ;;  %v269_v7 = vrot.slane %v258_v3, 2  ;;  %v279_v8 = vrot.slane %v258_v3, 4 }
 0x172   :  { %287 = vrot.lane.b32.xlu0 %v286_v5, %s2418_s30  ;;  %v405_v5 = vld [vmem:[%s2907_s12 + $0x8] sm:$0xff] }
 0x175   :  { %291 = vrot.lane.b32.xlu1 %v290_v6, %s2422_s5 }
 0x176   :  { %276 = vrot.lane.b32.xlu0 %v269_v7, %s2418_s30 }
 0x179   :  { %280 = vrot.lane.b32.xlu1 %v279_v8, %s2422_s5  ;;  %v407_v8 = vld [vmem:[%s2907_s12 + $0x18] sm:$0xff] }
 0x17a   :  { %270 = vrot.lane.b32.xlu0 %v269_v7, %s2422_s5  ;;  %v406_v7 = vld [vmem:[%s2907_s12 + $0x10] sm:$0xff] }
 0x1e3   :  { %v267_v9 = vpop.permute.xlu1 %266 }
 0x1e4   :  { %v288_v10 = vpop.permute.xlu0 %287  ;;  %v273_v21 = vsel %vm83_vm4, 0.0, %v267_v9  ;;  %v2703_v9 = vpack.c.bf16 %v411_v2, %v410_v0 }
 0x1e5   :  { %v294_v13 = vsel %vm83_vm4, %v258_v3, %v288_v10  ;;  %v296_v14 = vsel %vm83_vm4, %v259_v1, %v288_v10  ;;  %v2683_v1 = vpack.c.bf16 %v409_v63, %v408_v62  ;;  %v2707_v10 = vpack.c.bf16 %v407_v8, %v406_v7 }
 0x1e7   :  { %v292_v11 = vpop.permute.xlu1 %291 }
 0x1e8   :  { %v277_v12 = vpop.permute.xlu0 %276  ;;  %v295_v15 = vsel %vm274_vm9, %v294_v13, %v292_v11  ;;  %v297_v16 = vsel %vm274_vm9, %v296_v14, %v292_v11 }
 0x1e9   :  { %v283_v17 = vsel %vm83_vm4, %v258_v3, %v277_v12  ;;  %v299_v24 = vrot.slane %v295_v15, 2  ;;  %v302_v26 = vrot.slane %v297_v16, 4  ;;  %v404_v3 = vld [vmem:[%s2907_s12] sm:$0xff]  ;;  %s2424_s12 = smov 96  }
 0x1ea   :  { %v2694_v6 = vpack.c.bf16 %v405_v5, %v404_v3 }
 0x1eb   :  { %v281_v18 = vpop.permute.xlu1 %280 }
 0x1ec   :  { %v284_v22 = vsel %vm274_vm9, %v283_v17, %v281_v18  ;;  %v271_v23 = vpop.permute.xlu0 %270  ;;  %v2729_v17 = vld [vmem:[%s2910_s15] ss:$0 sm:$0xff] }
 0x1ed   :  { %v275_v25 = vsel %vm274_vm9, %v273_v21, %v271_v23  ;;  %v2756_v23 = vld [vmem:[%s2909_s14] ss:$0 sm:$0xff] }
 0x1ee   :  { %v304_v27 = vsel %vm148_vm5, %v275_v25, %v284_v22 }
 0x1ef   :  { %v305_v29 = vsel %vm150_vm0, %v304_v27, %v299_v24 }
 0x1f0   :  { %v306_v32 = vsel %vm152_vm6, %v305_v29, %v302_v26 }
 0x1f1   :  { %2071 = vmatmul.mubr.msk.f32.vlgmr.msra.gmra.mrb[0].mxu1 %vm307_vm10, %v306_v32 }
 0x1f2   :  { %2252 = vmatpush3.bf16.msra.mxu1 %v2617_v28  ;;  %2088 = vmatprep.mubr.msk.f32.mxu1 %vm2421_vm8, %v2420_v4 }
 0x1f3   :  { %2253 = vmatprep.subr.bf16.mxu1 %v2419_v60 }
 0x1f6   :  { %2255 = vmatpush3.bf16.msra.mxu1 %v2628_v33 }
 0x1f7   :  { %2262 = vmatprep.subr.bf16.mxu1 %v2419_v60 }
 0x1f9   :  { %2089 = vmatmul.mubr.f32.vlgmr.msra.gmra.mrb[2].mxu1 %v2420_v4 }
 0x1fa   :  { %2110 = vmatprep.mubr.msk.f32.mxu1 %vm2421_vm8, %v2420_v4  ;;  %2264 = vmatpush3.bf16.msra.mxu1 %v2683_v1 }
 0x1fb   :  { %2265 = vmatprep.subr.bf16.mxu1 %v2419_v60 }
 0x1fe   :  { %2267 = vmatpush3.bf16.msra.mxu1 %v2703_v9 }
 0x1ff   :  { %2277 = vmatprep.subr.bf16.mxu1 %v2419_v60 }
 0x201   :  { %2111 = vmatmul.mubr.f32.vlgmr.msra.gmra.mrb[4].mxu1 %v2420_v4 }
 0x202   :  { %2279 = vmatpush3.bf16.msra.mxu1 %v2694_v6  ;;  %2139 = vmatprep.mubr.msk.f32.mxu1 %vm2421_vm8, %v2420_v4 }
 0x203   :  { %2280 = vmatprep.subr.bf16.mxu1 %v2419_v60 }
 0x206   :  { %2282 = vmatpush3.bf16.msra.mxu1 %v2707_v10 }
 0x207   :  { %2289 = vmatprep.subr.bf16.mxu1 %v2419_v60 }
 0x2c4   :  { %v377_v39 = vpop.f32.mrb[0].mxu1 }
 0x2c5   :  { %v387_v40 = vmul.f32 %v1945_v37, %v377_v39  ;;  %v2072_v41 = vpop.f32.mrb[1].mxu1 }
 0x2c7   :  { %v394_v42 = vadd.f32 %v1946_v38, %v387_v40 }
 0x2c9   :  { %v2654_v43 = vmax.f32 %v394_v42, 0.0 }
 0x2cb   :  { %2078 = vmatmul.mubr.msk.f32.vlgmr.msra.gmra.mrb[2].mxu0 %vm274_vm9, %v2654_v43  ;;  %v782_v22 = vrot.slane %v2654_v43, 2 }
 0x2cc   :  { %v569_v45 = vpop.f32.mrb[2].mxu1  ;;  %2099 = vmatprep.mubr.msk.f32.mxu0 %vm2421_vm8, %v2420_v4  ;;  %2258 = vmatpush3.bf16.msra.mxu0 %v2694_v6 }
 0x2cd   :  { %v570_v46 = vadd.f32 %v2659_v44, %v569_v45  ;;  %v2090_v47 = vpop.f32.mrb[3].mxu1  ;;  %2259 = vmatprep.subr.bf16.mxu0 %v2419_v60 }
 0x2cf   :  { %581 = vrot.lane.b32.xlu0 %v570_v46, %s2423_s6 }
 0x2d0   :  { %2261 = vmatpush3.bf16.msra.mxu0 %v2707_v10 }
 0x2d1   :  { %2268 = vmatprep.subr.bf16.mxu0 %v2419_v60 }
 0x2d4   :  { %v752_v18 = vpop.f32.mrb[4].mxu1 }
 0x2d5   :  { %v753_v19 = vadd.f32 %v2729_v17, %v752_v18  ;;  %v2112_v20 = vpop.f32.mrb[5].mxu1 }
 0x341   :  { %v582_v56 = vpop.permute.xlu0 %581 }
 0x39e   :  { %v489_v49 = vpop.f32.mrb[2].mxu0 }
 0x39f   :  { %v490_v50 = vadd.f32 %v2670_v48, %v489_v49  ;;  %v2079_v51 = vpop.f32.mrb[3].mxu0 }
 0x3a1   :  { %v573_v52 = vadd.f32 %v570_v46, %v490_v50 }
 0x3a3   :  { %v1950_v53 = vmul.f32 -1.442695, %v573_v52 }
 0x3a5   :  { %2344 = vpow2.f32 %v1950_v53 }
 0x3af   :  { %v2345_v54 = vpop.eup %2344 }
 0x3b0   :  { %v577_v55 = vadd.f32 1.0, %v2345_v54 }
 0x3b2   :  { %2346 = vrcp.f32 %v577_v55 }
 0x3bc   :  { %v2347_v57 = vpop.eup %2346 }
 0x3bd   :  { %v584_v58 = vmul.f32 %v2347_v57, %v582_v56  ;;  %v591_v12 = vsub.f32 1.0, %v2347_v57  ;;  %v597_v14 = vmul.f32 0.0, %v2347_v57 }
 0x3bf   :  { %586 = vrot.lane.b32.xlu1 %v584_v58, %s2423_s6 }
 0x431   :  { %v587_v59 = vpop.permute.xlu1 %586 }
 0x432   :  { %v589_v61 = vadd.f32 %v587_v59, %v490_v50 }
 0x434   :  { %2348 = vtanh.f32 %v589_v61 }
 0x43e   :  { %v2349_v11 = vpop.eup %2348 }
 0x43f   :  { %593 = vrot.lane.b32.xlu0 %v2349_v11, %s2424_s12 }
 0x443   :  { %764 = vrot.lane.b32.xlu0 %v753_v19, %s2423_s6 }
 0x4b1   :  { %v594_v13 = vpop.permute.xlu0 %593 }
 0x4b2   :  { %v596_v15 = vmul.f32 %v594_v13, %v591_v12  ;;  %v1127_v13 = vrot.slane %v2654_v43, 4 }
 0x4b4   :  { %v2722_v16 = vadd.f32 %v597_v14, %v596_v15 }
 0x4b5   :  { %v765_v39 = vpop.permute.xlu0 %764 }
 0x4b6   :  { %606 = vrot.lane.b32.xlu1 %v2722_v16, %s2424_s12 }
 0x528   :  { %v607_v21 = vpop.permute.xlu1 %606 }
 0x529   :  { %2100 = vmatmul.mubr.msk.f32.vlgmr.msra.gmra.mrb[4].mxu0 %vm499_vm11, %v607_v21 }
 0x52a   :  { %2270 = vmatpush3.bf16.msra.mxu0 %v2644_v36  ;;  %2117 = vmatprep.mubr.msk.f32.mxu0 %vm2421_vm8, %v2420_v4 }
 0x52b   :  { %2271 = vmatprep.subr.bf16.mxu0 %v2419_v60 }
 0x52d   :  { %2118 = vmatmul.mubr.msk.f32.vlgmr.msra.gmra.mrb[6].mxu0 %vm274_vm9, %v782_v22 }
 0x52e   :  { %2273 = vmatpush3.bf16.msra.mxu0 %v2617_v28  ;;  %2128 = vmatprep.mubr.msk.f32.mxu0 %vm2421_vm8, %v2420_v4 }
 0x52f   :  { %2274 = vmatprep.subr.bf16.mxu0 %v2419_v60 }
 0x532   :  { %2276 = vmatpush3.bf16.msra.mxu0 %v2628_v33 }
 0x533   :  { %2283 = vmatprep.subr.bf16.mxu0 %v2419_v60 }
 0x535   :  { %2129 = vmatmul.mubr.msk.f32.vlgmr.msra.gmra.mrb[8].mxu0 %vm499_vm11, %v607_v21 }
 0x536   :  { %2285 = vmatpush3.bf16.msra.mxu0 %v2683_v1  ;;  %2150 = vmatprep.mubr.msk.f32.mxu0 %vm2421_vm8, %v2420_v4 }
 0x537   :  { %2286 = vmatprep.subr.bf16.mxu0 %v2419_v60 }
 0x53a   :  { %2288 = vmatpush3.bf16.msra.mxu0 %v2703_v9 }
 0x53b   :  { %2298 = vmatprep.subr.bf16.mxu0 %v2419_v60 }
 0x5fc   :  { %v676_v24 = vpop.f32.mrb[4].mxu0 }
 0x5fd   :  { %v677_v25 = vadd.f32 %v2756_v23, %v676_v24  ;;  %v2101_v26 = vpop.f32.mrb[5].mxu0 }
 0x5ff   :  { %v756_v27 = vadd.f32 %v753_v19, %v677_v25 }
 0x600   :  { %v851_v29 = vpop.f32.mrb[6].mxu0 }
 0x601   :  { %v1954_v30 = vmul.f32 -1.442695, %v756_v27  ;;  %v2119_v31 = vpop.f32.mrb[7].mxu0  ;;  %v852_v42 = vadd.f32 %v2670_v48, %v851_v29 }
 0x603   :  { %2350 = vpow2.f32 %v1954_v30 }
 0x608   :  { %v921_v32 = vpop.f32.mrb[8].mxu0 }
 0x609   :  { %v922_v34 = vadd.f32 %v2659_v44, %v921_v32  ;;  %v2130_v35 = vpop.f32.mrb[9].mxu0 }
 0x60b   :  { %933 = vrot.lane.b32.xlu1 %v922_v34, %s2423_s6  ;;  %v925_v45 = vadd.f32 %v922_v34, %v852_v42 }
 0x60d   :  { %v2351_v37 = vpop.eup %2350  ;;  %v1957_v46 = vmul.f32 -1.442695, %v925_v45 }
 0x60e   :  { %v760_v38 = vadd.f32 1.0, %v2351_v37 }
 0x610   :  { %2352 = vrcp.f32 %v760_v38 }
 0x611   :  { %2354 = vpow2.f32 %v1957_v46 }
 0x61a   :  { %v2353_v40 = vpop.eup %2352 }
 0x61b   :  { %v767_v41 = vmul.f32 %v2353_v40, %v765_v39  ;;  %v2355_v47 = vpop.eup %2354  ;;  %v774_v59 = vsub.f32 1.0, %v2353_v40  ;;  %v780_v62 = vmul.f32 0.0, %v2353_v40 }
 0x61c   :  { %v929_v49 = vadd.f32 1.0, %v2355_v47 }
 0x61d   :  { %769 = vrot.lane.b32.xlu0 %v767_v41, %s2423_s6 }
 0x61e   :  { %2356 = vrcp.f32 %v929_v49 }
 0x628   :  { %v2357_v50 = vpop.eup %2356 }
 0x629   :  { %v943_v2 = vsub.f32 1.0, %v2357_v50  ;;  %v949_v5 = vmul.f32 %v2357_v50, %v2722_v16 }
 0x67d   :  { %v934_v51 = vpop.permute.xlu1 %933 }
 0x67e   :  { %v936_v52 = vmul.f32 %v2357_v50, %v934_v51 }
 0x680   :  { %938 = vrot.lane.b32.xlu1 %v936_v52, %s2423_s6 }
 0x68f   :  { %v770_v53 = vpop.permute.xlu0 %769 }
 0x690   :  { %v772_v54 = vadd.f32 %v770_v53, %v677_v25 }
 0x692   :  { %2358 = vtanh.f32 %v772_v54 }
 0x69c   :  { %v2359_v55 = vpop.eup %2358 }
 0x69d   :  { %776 = vrot.lane.b32.xlu0 %v2359_v55, %s2424_s12 }
 0x6f2   :  { %v939_v56 = vpop.permute.xlu1 %938 }
 0x6f3   :  { %v941_v57 = vadd.f32 %v939_v56, %v852_v42 }
 0x6f5   :  { %2360 = vtanh.f32 %v941_v57 }
 0x6ff   :  { %v2361_v58 = vpop.eup %2360 }
 0x700   :  { %945 = vrot.lane.b32.xlu1 %v2361_v58, %s2424_s12 }
 0x70f   :  { %v777_v61 = vpop.permute.xlu0 %776 }
 0x710   :  { %v779_v63 = vmul.f32 %v777_v61, %v774_v59 }
 0x712   :  { %v2766_v0 = vadd.f32 %v780_v62, %v779_v63 }
 0x714   :  { %1027 = vrot.lane.b32.xlu0 %v2766_v0, %s2424_s12 }
 0x772   :  { %v946_v3 = vpop.permute.xlu1 %945 }
 0x773   :  { %v948_v7 = vmul.f32 %v946_v3, %v943_v2 }
 0x775   :  { %v2771_v8 = vadd.f32 %v949_v5, %v948_v7  ;;  %v1472_v5 = vrot.slane %v2654_v43, 6 }
 0x777   :  { %952 = vrot.lane.b32.xlu1 %v2771_v8, %s2424_s12 }
 0x786   :  { %v1028_v11 = vpop.permute.xlu0 %1027 }
 0x787   :  { %2151 = vmatmul.mubr.msk.f32.vlgmr.msra.gmra.mrb[10].mxu0 %vm499_vm11, %v1028_v11 }
 0x788   :  { %2300 = vmatpush3.bf16.msra.mxu0 %v2694_v6  ;;  %2179 = vmatprep.mubr.msk.f32.mxu0 %vm2421_vm8, %v2420_v4 }
 0x789   :  { %2301 = vmatprep.subr.bf16.mxu0 %v2419_v60 }
 0x78c   :  { %2303 = vmatpush3.bf16.msra.mxu0 %v2707_v10 }
 0x78d   :  { %2310 = vmatprep.subr.bf16.mxu0 %v2419_v60 }
 0x7e9   :  { %v953_v12 = vpop.permute.xlu1 %952 }
 0x7ea   :  { %2140 = vmatmul.mubr.msk.f32.vlgmr.msra.gmra.mrb[6].mxu1 %vm499_vm11, %v953_v12 }
 0x7eb   :  { %2291 = vmatpush3.bf16.msra.mxu1 %v2644_v36  ;;  %2157 = vmatprep.mubr.msk.f32.mxu1 %vm2421_vm8, %v2420_v4 }
 0x7ec   :  { %2292 = vmatprep.subr.bf16.mxu1 %v2419_v60 }
 0x7ee   :  { %2158 = vmatmul.mubr.msk.f32.vlgmr.msra.gmra.mrb[8].mxu1 %vm274_vm9, %v1127_v13 }
 0x7ef   :  { %2294 = vmatpush3.bf16.msra.mxu1 %v2617_v28  ;;  %2168 = vmatprep.mubr.msk.f32.mxu1 %vm2421_vm8, %v2420_v4 }
 0x7f0   :  { %2295 = vmatprep.subr.bf16.mxu1 %v2419_v60 }
 0x7f3   :  { %2297 = vmatpush3.bf16.msra.mxu1 %v2628_v33 }
 0x7f4   :  { %2304 = vmatprep.subr.bf16.mxu1 %v2419_v60 }
 0x7f6   :  { %2169 = vmatmul.mubr.msk.f32.vlgmr.msra.gmra.mrb[10].mxu1 %vm499_vm11, %v953_v12 }
 0x7f7   :  { %2306 = vmatpush3.bf16.msra.mxu1 %v2683_v1  ;;  %2190 = vmatprep.mubr.msk.f32.mxu1 %vm2421_vm8, %v2420_v4 }
 0x7f8   :  { %2307 = vmatprep.subr.bf16.mxu1 %v2419_v60 }
 0x7fb   :  { %2309 = vmatpush3.bf16.msra.mxu1 %v2703_v9 }
 0x7fc   :  { %2319 = vmatprep.subr.bf16.mxu1 %v2419_v60 }
 0x85a   :  { %v1097_v14 = vpop.f32.mrb[10].mxu0 }
 0x85b   :  { %v1098_v15 = vadd.f32 %v2729_v17, %v1097_v14  ;;  %v2152_v16 = vpop.f32.mrb[11].mxu0 }
 0x85d   :  { %1109 = vrot.lane.b32.xlu0 %v1098_v15, %s2423_s6 }
 0x8bd   :  { %v1022_v18 = vpop.f32.mrb[6].mxu1 }
 0x8be   :  { %v1023_v19 = vadd.f32 %v2756_v23, %v1022_v18  ;;  %v2141_v20 = vpop.f32.mrb[7].mxu1 }
 0x8c0   :  { %v1101_v21 = vadd.f32 %v1098_v15, %v1023_v19 }
 0x8c1   :  { %v1196_v22 = vpop.f32.mrb[8].mxu1 }
 0x8c2   :  { %v1960_v24 = vmul.f32 -1.442695, %v1101_v21  ;;  %v2159_v25 = vpop.f32.mrb[9].mxu1  ;;  %v1197_v37 = vadd.f32 %v2670_v48, %v1196_v22 }
 0x8c4   :  { %2362 = vpow2.f32 %v1960_v24 }
 0x8c9   :  { %v1266_v26 = vpop.f32.mrb[10].mxu1 }
 0x8ca   :  { %v1267_v27 = vadd.f32 %v2659_v44, %v1266_v26  ;;  %v2170_v29 = vpop.f32.mrb[11].mxu1 }
 0x8cc   :  { %1278 = vrot.lane.b32.xlu1 %v1267_v27, %s2423_s6  ;;  %v1270_v38 = vadd.f32 %v1267_v27, %v1197_v37 }
 0x8ce   :  { %v2363_v30 = vpop.eup %2362  ;;  %v1963_v39 = vmul.f32 -1.442695, %v1270_v38 }
 0x8cf   :  { %v1105_v31 = vadd.f32 1.0, %v2363_v30  ;;  %v1110_v34 = vpop.permute.xlu0 %1109 }
 0x8d1   :  { %2364 = vrcp.f32 %v1105_v31 }
 0x8d2   :  { %2366 = vpow2.f32 %v1963_v39 }
 0x8db   :  { %v2365_v32 = vpop.eup %2364 }
 0x8dc   :  { %v1112_v35 = vmul.f32 %v2365_v32, %v1110_v34  ;;  %v2367_v40 = vpop.eup %2366  ;;  %v1119_v54 = vsub.f32 1.0, %v2365_v32  ;;  %v1125_v56 = vmul.f32 %v2365_v32, %v2766_v0 }
 0x8dd   :  { %v1274_v41 = vadd.f32 1.0, %v2367_v40 }
 0x8de   :  { %1114 = vrot.lane.b32.xlu0 %v1112_v35, %s2423_s6 }
 0x8df   :  { %2368 = vrcp.f32 %v1274_v41 }
 0x8e9   :  { %v2369_v42 = vpop.eup %2368 }
 0x8ea   :  { %v1288_v59 = vsub.f32 1.0, %v2369_v42  ;;  %v1294_v62 = vmul.f32 %v2369_v42, %v2771_v8 }
 0x93e   :  { %v1279_v45 = vpop.permute.xlu1 %1278 }
 0x93f   :  { %v1281_v46 = vmul.f32 %v2369_v42, %v1279_v45 }
 0x941   :  { %1283 = vrot.lane.b32.xlu1 %v1281_v46, %s2423_s6 }
 0x950   :  { %v1115_v47 = vpop.permute.xlu0 %1114 }
 0x951   :  { %v1117_v49 = vadd.f32 %v1115_v47, %v1023_v19 }
 0x953   :  { %2370 = vtanh.f32 %v1117_v49 }
 0x95d   :  { %v2371_v50 = vpop.eup %2370 }
 0x95e   :  { %1121 = vrot.lane.b32.xlu0 %v2371_v50, %s2424_s12 }
 0x9b3   :  { %v1284_v51 = vpop.permute.xlu1 %1283 }
 0x9b4   :  { %v1286_v52 = vadd.f32 %v1284_v51, %v1197_v37 }
 0x9b6   :  { %2372 = vtanh.f32 %v1286_v52 }
 0x9c0   :  { %v2373_v53 = vpop.eup %2372 }
 0x9c1   :  { %1290 = vrot.lane.b32.xlu1 %v2373_v53, %s2424_s12 }
 0x9d0   :  { %v1122_v55 = vpop.permute.xlu0 %1121 }
 0x9d1   :  { %v1124_v57 = vmul.f32 %v1122_v55, %v1119_v54 }
 0x9d3   :  { %v2813_v58 = vadd.f32 %v1125_v56, %v1124_v57 }
 0x9d5   :  { %1372 = vrot.lane.b32.xlu0 %v2813_v58, %s2424_s12 }
 0xa33   :  { %v1291_v61 = vpop.permute.xlu1 %1290 }
 0xa34   :  { %v1293_v63 = vmul.f32 %v1291_v61, %v1288_v59 }
 0xa36   :  { %v2818_v2 = vadd.f32 %v1294_v62, %v1293_v63 }
 0xa38   :  { %1297 = vrot.lane.b32.xlu1 %v2818_v2, %s2424_s12 }
 0xa47   :  { %v1373_v3 = vpop.permute.xlu0 %1372 }
 0xa48   :  { %2191 = vmatmul.mubr.msk.f32.vlgmr.msra.gmra.mrb[12].mxu1 %vm499_vm11, %v1373_v3  ;;  %v2425_v3 = vmov 0  }
 0xa49   :  { %2321 = vmatpush3.bf16.msra.mxu1 %v2694_v6  ;;  %2219 = vmatprep.mubr.msk.f32.mxu1 %vm2421_vm8, %v2420_v4 }
 0xa4a   :  { %2322 = vmatprep.subr.bf16.mxu1 %v2419_v60  ;;  %2342 = vset.pattern.permute.xlu0 %v2425_v3 }
 0xa4b   :  { %2343 = vset.pattern.permute.xlu1 %v2425_v3 }
 0xa4d   :  { %2324 = vmatpush3.bf16.msra.mxu1 %v2707_v10 }
 0xa4e   :  { %2233 = vmatprep.subr.mxu1 %v2420_v4 }
 0xaaa   :  { %v1298_v0 = vpop.permute.xlu1 %1297 }
 0xaab   :  { %2180 = vmatmul.mubr.msk.f32.vlgmr.msra.gmra.mrb[12].mxu0 %vm499_vm11, %v1298_v0 }
 0xaac   :  { %2312 = vmatpush3.bf16.msra.mxu0 %v2644_v36  ;;  %2197 = vmatprep.mubr.msk.f32.mxu0 %vm2421_vm8, %v2420_v4 }
 0xaad   :  { %2313 = vmatprep.subr.bf16.mxu0 %v2419_v60 }
 0xaaf   :  { %2198 = vmatmul.mubr.msk.f32.vlgmr.msra.gmra.mrb[14].mxu0 %vm274_vm9, %v1472_v5 }
 0xab0   :  { %2315 = vmatpush3.bf16.msra.mxu0 %v2617_v28  ;;  %2208 = vmatprep.mubr.msk.f32.mxu0 %vm2421_vm8, %v2420_v4 }
 0xab1   :  { %2316 = vmatprep.subr.bf16.mxu0 %v2419_v60 }
 0xab4   :  { %2318 = vmatpush3.bf16.msra.mxu0 %v2628_v33 }
 0xab5   :  { %2325 = vmatprep.subr.bf16.mxu0 %v2419_v60 }
 0xab7   :  { %2209 = vmatmul.mubr.msk.f32.vlgmr.msra.gmra.mrb[16].mxu0 %vm499_vm11, %v1298_v0 }
 0xab8   :  { %2327 = vmatpush3.bf16.msra.mxu0 %v2683_v1  ;;  %2230 = vmatprep.mubr.msk.f32.mxu0 %vm2421_vm8, %v2420_v4 }
 0xab9   :  { %2328 = vmatprep.subr.bf16.mxu0 %v2419_v60 }
 0xabc   :  { %2330 = vmatpush3.bf16.msra.mxu0 %v2703_v9 }
 0xb1b   :  { %v1442_v28 = vpop.f32.mrb[12].mxu1 }
 0xb1c   :  { %v1443_v36 = vadd.f32 %v2729_v17, %v1442_v28  ;;  %v2192_v43 = vpop.f32.mrb[13].mxu1 }
 0xb1e   :  { %1454 = vrot.lane.b32.xlu0 %v1443_v36, %s2423_s6 }
 0xb7e   :  { %v1367_v33 = vpop.f32.mrb[12].mxu0 }
 0xb7f   :  { %v1368_v6 = vadd.f32 %v2756_v23, %v1367_v33  ;;  %v2181_v10 = vpop.f32.mrb[13].mxu0  ;;  %v1912_v33 = vld [vmem:[#allocation2] sm:$0x1] }
 0xb80   :  { %v1817_v10 = vld [vmem:[%s2911_s16] sm:$0x1]  ;;  %s2426_s16 = smov [#allocation3]  }
 0xb81   :  { %v1446_v7 = vadd.f32 %v1443_v36, %v1368_v6  ;;  %s1931_s3 = sshll.u32 %s2426_s16, 4  ;;  %s1932_s3 = int_to_ptr.vmem [resolvable:$true] %s1931_s3 }
 0xb82   :  { %v1541_v8 = vpop.f32.mrb[14].mxu0  ;;  %s2392_s10 = scalar_lea.vmem %s1932_s3, 16  ;;  %s2396_s11 = scalar_lea.vmem %s1932_s3, 32 }
 0xb83   :  { %v1966_v1 = vmul.f32 -1.442695, %v1446_v7  ;;  %v2199_v11 = vpop.f32.mrb[15].mxu0  ;;  %v1542_v19 = vadd.f32 %v2670_v48, %v1541_v8  ;;  %v1819_v7 = vld [vmem:[%s2924_s7] sm:$0x3]  ;;  %p2393_p0 = scmp.ne.s32.totalorder %s1932_s3, %s2392_s10  ;;  %p2397_p1 = scmp.lt.s32.totalorder %s1932_s3, %s1932_s3 }
 0xb84   :  { %p2398_p2 = scmp.lt.s32.totalorder %s2396_s11, %s2392_s10 }
 0xb85   :  { %2374 = vpow2.f32 %v1966_v1 }
 0xb86   :  { %p2399_p3 = por %p2398_p2, %p2397_p1 }
 0xb88   :  { %p2400_p4 = pnand %p2399_p3, %p2393_p0 }
 0xb8a   :  { %v1611_v12 = vpop.f32.mrb[16].mxu0 }
 0xb8b   :  { %v1612_v60 = vadd.f32 %v2659_v44, %v1611_v12  ;;  %v2210_v13 = vpop.f32.mrb[17].mxu0 }
 0xb8d   :  { %1623 = vrot.lane.b32.xlu1 %v1612_v60, %s2423_s6  ;;  %v1615_v20 = vadd.f32 %v1612_v60, %v1542_v19 }
 0xb8f   :  { %v2375_v9 = vpop.eup %2374  ;;  %v1969_v21 = vmul.f32 -1.442695, %v1615_v20 }
 0xb90   :  { %v1450_v14 = vadd.f32 1.0, %v2375_v9  ;;  %v1455_v16 = vpop.permute.xlu0 %1454  ;;  %v1918_v9 = vlaneseq }
 0xb92   :  { %2376 = vrcp.f32 %v1450_v14  ;;  %v1919_v14 = vshrl.u32 %v1918_v9, 7 }
 0xb93   :  { %2378 = vpow2.f32 %v1969_v21 }
 0xb9c   :  { %v2377_v15 = vpop.eup %2376 }
 0xb9d   :  { %v1457_v18 = vmul.f32 %v2377_v15, %v1455_v16  ;;  %v2379_v22 = vpop.eup %2378  ;;  %v1464_v34 = vsub.f32 1.0, %v2377_v15  ;;  %v1470_v37 = vmul.f32 %v2377_v15, %v2813_v58  ;;  %v1920_v16 = vsub.s32 0, %v1919_v14 }
 0xb9e   :  { %v1619_v24 = vadd.f32 1.0, %v2379_v22 }
 0xb9f   :  { %1459 = vrot.lane.b32.xlu0 %v1457_v18, %s2423_s6 }
 0xba0   :  { %2380 = vrcp.f32 %v1619_v24 }
 0xbaa   :  { %v2381_v44 = vpop.eup %2380 }
 0xbab   :  { %v1633_v40 = vsub.f32 1.0, %v2381_v44  ;;  %v1639_v42 = vmul.f32 %v2381_v44, %v2818_v2 }
 0xbff   :  { %v1624_v25 = vpop.permute.xlu1 %1623 }
 0xc00   :  { %v1626_v26 = vmul.f32 %v2381_v44, %v1624_v25 }
 0xc02   :  { %1628 = vrot.lane.b32.xlu1 %v1626_v26, %s2423_s6 }
 0xc11   :  { %v1460_v27 = vpop.permute.xlu0 %1459 }
 0xc12   :  { %v1462_v29 = vadd.f32 %v1460_v27, %v1368_v6 }
 0xc14   :  { %2382 = vtanh.f32 %v1462_v29 }
 0xc1e   :  { %v2383_v30 = vpop.eup %2382 }
 0xc1f   :  { %1466 = vrot.lane.b32.xlu0 %v2383_v30, %s2424_s12 }
 0xc74   :  { %v1629_v31 = vpop.permute.xlu1 %1628 }
 0xc75   :  { %v1631_v32 = vadd.f32 %v1629_v31, %v1542_v19 }
 0xc77   :  { %2384 = vtanh.f32 %v1631_v32 }
 0xc81   :  { %v2385_v48 = vpop.eup %2384 }
 0xc82   :  { %1635 = vrot.lane.b32.xlu1 %v2385_v48, %s2424_s12 }
 0xc91   :  { %v1467_v35 = vpop.permute.xlu0 %1466 }
 0xc92   :  { %v1469_v38 = vmul.f32 %v1467_v35, %v1464_v34 }
 0xc94   :  { %v1471_v39 = vadd.f32 %v1470_v37, %v1469_v38 }
 0xc96   :  { %1717 = vrot.lane.b32.xlu0 %v1471_v39, %s2424_s12 }
 0xcf4   :  { %v1636_v41 = vpop.permute.xlu1 %1635 }
 0xcf5   :  { %v1638_v45 = vmul.f32 %v1636_v41, %v1633_v40 }
 0xcf7   :  { %v1640_v46 = vadd.f32 %v1639_v42, %v1638_v45 }
 0xcf9   :  { %1642 = vrot.lane.b32.xlu1 %v1640_v46, %s2424_s12 }
 0xd08   :  { %v1718_v47 = vpop.permute.xlu0 %1717 }
 0xd09   :  { %2231 = vmatmul.mubr.msk.f32.vlgmr.msra.gmra.mrb[18].mxu0 %vm499_vm11, %v1718_v47 }
 0xd6b   :  { %v1643_v49 = vpop.permute.xlu1 %1642 }
 0xd6c   :  { %2220 = vmatmul.mubr.msk.f32.vlgmr.msra.gmra.mrb[14].mxu1 %vm499_vm11, %v1643_v49 }
 0xd6d   :  { %2235 = vmatprep.mubr.msk.f32.mxu1 %vm2421_vm8, %v2420_v4 }
 0xddc   :  { %v1787_v50 = vpop.f32.mrb[18].mxu0 }
 0xddd   :  { %v1788_v51 = vadd.f32 %v2729_v17, %v1787_v50  ;;  %v2232_v52 = vpop.f32.mrb[19].mxu0 }
 0xddf   :  { %1799 = vrot.lane.b32.xlu0 %v1788_v51, %s2423_s6 }
 0xe3f   :  { %v1712_v53 = vpop.f32.mrb[14].mxu1 }
 0xe40   :  { %v1713_v54 = vadd.f32 %v2756_v23, %v1712_v53  ;;  %v2221_v55 = vpop.f32.mrb[15].mxu1  ;;  %v1818_v23 = vld [vmem:[%s2912_s17] sm:$0x3] }
 0xe42   :  { %v1791_v56 = vadd.f32 %v1788_v51, %v1713_v54 }
 0xe44   :  { %v1972_v57 = vmul.f32 -1.442695, %v1791_v56 }
 0xe46   :  { %2386 = vpow2.f32 %v1972_v57 }
 0xe50   :  { %v2387_v58 = vpop.eup %2386 }
 0xe51   :  { %v1795_v59 = vadd.f32 1.0, %v2387_v58  ;;  %v1800_v62 = vpop.permute.xlu0 %1799 }
 0xe53   :  { %2388 = vrcp.f32 %v1795_v59 }
 0xe5d   :  { %v2389_v61 = vpop.eup %2388 }
 0xe5e   :  { %v1802_v63 = vmul.f32 %v2389_v61, %v1800_v62  ;;  %v1809_v0 = vsub.f32 1.0, %v2389_v61  ;;  %v1815_v28 = vmul.f32 %v2389_v61, %v1471_v39 }
 0xe60   :  { %1804 = vrot.lane.b32.xlu1 %v1802_v63, %s2423_s6 }
 0xed2   :  { %v1805_v4 = vpop.permute.xlu1 %1804 }
 0xed3   :  { %v1807_v17 = vadd.f32 %v1805_v4, %v1713_v54 }
 0xed5   :  { %2390 = vtanh.f32 %v1807_v17 }
 0xedf   :  { %v2391_v2 = vpop.eup %2390 }
 0xee0   :  { %1811 = vrot.lane.b32.xlu0 %v2391_v2, %s2424_s12 }
 0xee4   :  { %1822 = vperm.xlu0 %2342, %v1818_v23  }
 0xf52   :  { %v1812_v5 = vpop.permute.xlu0 %1811 }
 0xf53   :  { %v1814_v36 = vmul.f32 %v1812_v5, %v1809_v0 }
 0xf55   :  { %v1816_v43 = vadd.f32 %v1815_v28, %v1814_v36 }
 0xf57   :  { %1835 = vrot.lane.b32.xlu1 %v1816_v43, %s2424_s12 }
 0xf5b   :  { %1915 = vperm.xlu1 %2343, %v1912_v33  }
 0xf63   :  { %v1823_v8 = vpop.permute.xlu0 %1822 }
 0xf64   :  { %v1825_v1 = vmul.f32 %v1823_v8, %v1819_v7 }
 0xf66   :  { %v1827_v11 = vsel %vm1826_vm12, %v1825_v1, 0.0 }
 0xf67   :  { %v1828_v12 = vrot.slane %v1827_v11, 4 }
 0xf69   :  { %v1829_v60 = vadd.f32 %v1828_v12, %v1827_v11 }
 0xf6b   :  { %v1830_v13 = vrot.slane %v1829_v60, 2 }
 0xf6d   :  { %v1831_v15 = vadd.f32 %v1830_v13, %v1829_v60 }
 0xf6f   :  { %v1832_v18 = vrot.slane %v1831_v15, 1 }
 0xf71   :  { %v1833_v21 = vadd.f32 %v1832_v18, %v1831_v15 }
 0xfc9   :  { %v1836_v6 = vpop.permute.xlu1 %1835 }
 0xfca   :  { %2234 = vmatpush3.xpose.msk.msra.mxu1 %vm499_vm11, %v1836_v6 }
 0xfcd   :  { %2236 = vmatmul.mubr.msk.f32.vlgmr.msra.gmra.mrb[16].mxu1 %vm499_vm11, %v1817_v10 }
 0xfda   :  { %v1916_v19 = vpop.permute.xlu1 %1915 }
 0xfdb   :  { %v1921_v20 = vrot.slane %v1916_v19, %v1920_v16 }
0x10a0   :  { %v1908_v22 = vpop.f32.mrb[16].mxu1 }
0x10a1   :  { %v1909_v24 = vadd.f32 %v1908_v22, %v1833_v21  ;;  %v2237_v44 = vpop.f32.mrb[17].mxu1 }
0x10a3   :  { %v1922_v25 = vadd.f32 %v1921_v20, %v1909_v24 }
0x10a5   :  { %1924 = vst.msk [vmem:[#allocation3] sm:$0x1] %vm1923_vm13, %v1922_v25 }
0x10a6   :  { %2403 = shalt.err (!%p2400_p4)
}
0x10a7   :  { %s2404_s27 = scalar_lea.hbm %s2914_s19, 16 }
0x10a8   :  { %p2405_p5 = scmp.ne.s32.totalorder %s2914_s19, %s2404_s27  ;;  %p2408_p6 = scmp.lt.u32.totalorder %s2404_s27, %s2914_s19 }
0x10aa   :  { %p2410_p7 = pnand %p2408_p6, %p2405_p5 }
0x10ac   :  { %2413 = shalt.err (!%p2410_p7)
}
0x10ad   :  { %1934 = dma.vmem_to_hbm [thread:$0]  %s1932_s3, 16, %s2914_s19, [#allocation4]  }
0x10ae   :  { %2414 = dma.done.wait [#allocation4], 16  }
0x10af   :  { %2415 = vsyncadd [#allocation4], 4294967280 }
0x10b0   :  { %1938 = vsyncpa [#allocation4], 1 }

</bundles_post_ra>
